<compile_context>
chip_gen: v5e
topology: v5e:2x2
jax: 0.10.0
libtpu: 0.0.40
codegen_flags: <defaults>
</compile_context>

<pallas_src>
import functools

import jax
import jax.numpy as jnp
from jax.experimental import pallas as pl
from jax.experimental.pallas import tpu as pltpu

IN_DIM = 28 * 28     # 784 (multiple of 16 -> clean bf16 contraction dim, no K pad)
HID = 64
OUT_DIM = 10

HID_PAD = 128        # hidden 64 -> 128 (lane-dense activations / weights)
OUT_T = 16           # classes 10 -> 16 on sublanes of the transposed output
NEG_BIG = -1e30      # bias for padded (fake) classes


def _round_up(n, m):
    return ((n + m - 1) // m) * m


def mlp_kernel(x_ref, w1_ref, w234_ref, b_ref, o_ref):
    # Whole hot path (4 matmuls, ReLUs, log-softmax) fused in one kernel.
    # x arrives f32 and is cast to bf16 here (VPU); all accumulation is f32.
    x = x_ref[...].astype(jnp.bfloat16)                               # [tb, 784]

    h = jnp.dot(x, w1_ref[...], preferred_element_type=jnp.float32) + b_ref[0:1, :]
    h = jnp.maximum(h, 0.0).astype(jnp.bfloat16)

    h = jnp.dot(h, w234_ref[0], preferred_element_type=jnp.float32) + b_ref[1:2, :]
    h = jnp.maximum(h, 0.0).astype(jnp.bfloat16)

    h = jnp.dot(h, w234_ref[1], preferred_element_type=jnp.float32) + b_ref[2:3, :]
    h = jnp.maximum(h, 0.0).astype(jnp.bfloat16)

    logits = jnp.dot(h, w234_ref[2], preferred_element_type=jnp.float32) + b_ref[3:4, :]

    # Padded class columns carry a -1e30 bias (zero weight columns): they never
    # win the max and their exp() underflows to exactly 0 in the sum.
    m = jnp.max(logits, axis=-1, keepdims=True)
    shifted = logits - m
    lse = jnp.log(jnp.sum(jnp.exp(shifted), axis=-1, keepdims=True))
    logp = shifted - lse                                              # [tb, 128] f32

    # Transposed, lane-dense writeback: [16 classes, tb batch] f32 (XLU transpose;
    # that slot has slack in this kernel).
    o_ref[...] = jnp.transpose(logp)[:OUT_T, :]


def _pad2(a, rows, cols):
    return jnp.pad(a, ((0, rows - a.shape[0]), (0, cols - a.shape[1])))


def prepare_params(params):
    """One-time padding / bf16 cast / stacking of the weights (hoisted out of
    the per-call forward path).  Returns (w1p, w234p, bstack)."""
    w1, b1, w2, b2, w3, b3, w4, b4 = params

    w1p = _pad2(w1, IN_DIM, HID_PAD).astype(jnp.bfloat16)             # [784, 128]
    w234p = jnp.stack([
        _pad2(w2, HID_PAD, HID_PAD),
        _pad2(w3, HID_PAD, HID_PAD),
        _pad2(w4, HID_PAD, HID_PAD),
    ]).astype(jnp.bfloat16)                                           # [3, 128, 128]

    b4p = jnp.full((HID_PAD,), NEG_BIG, jnp.float32).at[:OUT_DIM].set(
        b4.astype(jnp.float32))
    bstack = jnp.stack([
        jnp.pad(b1.astype(jnp.float32), (0, HID_PAD - HID)),
        jnp.pad(b2.astype(jnp.float32), (0, HID_PAD - HID)),
        jnp.pad(b3.astype(jnp.float32), (0, HID_PAD - HID)),
        b4p,
    ])                                                                # [4, 128] f32
    return w1p, w234p, bstack


def net_forward(x, prepared, *, tb=512):
    """x: [B, 784] float32 -> [B, 10] log-probabilities (f32)."""
    w1p, w234p, bstack = prepared
    B, D = x.shape
    assert D == IN_DIM

    # Batch tile: multiple of 128 so the transposed [16, tb] output store stays
    # lane-dense; capped so batches > 128 rows keep >= 2 grid steps (so v7x's
    # two TensorCores both get work via the "parallel" batch axis).
    tb = _round_up(max(tb, 128), 128)
    if B > 128:
        tb = min(tb, max(128, _round_up(-(-B // 2), 128)))
    else:
        tb = 128
    Bp = _round_up(B, tb)
    grid = Bp // tb

    # Only materialize a padded copy of x when B is not already a tile multiple.
    xin = x if Bp == B else jnp.pad(x, ((0, Bp - B), (0, 0)))

    const2 = lambda shape: pl.BlockSpec(shape, lambda i: (0, 0))

    out_t = pl.pallas_call(
        mlp_kernel,
        out_shape=jax.ShapeDtypeStruct((OUT_T, Bp), jnp.float32),
        grid_spec=pltpu.PrefetchScalarGridSpec(
            num_scalar_prefetch=0,
            grid=(grid,),
            in_specs=[
                pl.BlockSpec((tb, IN_DIM), lambda i: (i, 0)),          # x tile (784 = full dim)
                const2((IN_DIM, HID_PAD)),                             # w1  [784,128] bf16
                pl.BlockSpec((3, HID_PAD, HID_PAD),
                             lambda i: (0, 0, 0)),                     # w2/w3/w4 stacked
                const2((4, HID_PAD)),                                  # b1..b4 [4,128] f32
            ],
            out_specs=pl.BlockSpec((OUT_T, tb), lambda i: (0, i)),     # transposed output
        ),
        compiler_params=pltpu.CompilerParams(
            dimension_semantics=("parallel",)),
    )(xin, w1p, w234p, bstack)

    # Drop fake classes / batch padding and restore the [B, 10] layout.
    return out_t[:OUT_DIM, :B].T


def init_params(key):
    """Deterministic synthetic parameters (shapes match the PyTorch module)."""
    ks = jax.random.split(key, 8)

    def lin(kw, kb, fan_in, fan_out):
        scale = 1.0 / jnp.sqrt(fan_in)
        w = jax.random.uniform(kw, (fan_in, fan_out), jnp.float32, -scale, scale)
        b = jax.random.uniform(kb, (fan_out,), jnp.float32, -scale, scale)
        return w, b

    w1, b1 = lin(ks[0], ks[1], IN_DIM, HID)
    w2, b2 = lin(ks[2], ks[3], HID, HID)
    w3, b3 = lin(ks[4], ks[5], HID, HID)
    w4, b4 = lin(ks[6], ks[7], HID, OUT_DIM)
    return (w1, b1, w2, b2, w3, b3, w4, b4)


def reference_forward_f32(x, params):
    """Pure-JAX f32 reference matching the PyTorch forward semantics."""
    w1, b1, w2, b2, w3, b3, w4, b4 = params
    h = jax.nn.relu(x @ w1 + b1)
    h = jax.nn.relu(h @ w2 + b2)
    h = jax.nn.relu(h @ w3 + b3)
    return jax.nn.log_softmax(h @ w4 + b4, axis=1)


def reference_forward_bf16(x, params):
    """Pure-JAX reference with the same bf16 data path / f32 accumulation."""
    w1, b1, w2, b2, w3, b3, w4, b4 = params
    bf16, f32 = jnp.bfloat16, jnp.float32
    h = x.astype(bf16)
    h = jnp.dot(h, w1.astype(bf16), preferred_element_type=f32) + b1
    h = jnp.maximum(h, 0.0).astype(bf16)
    h = jnp.dot(h, w2.astype(bf16), preferred_element_type=f32) + b2
    h = jnp.maximum(h, 0.0).astype(bf16)
    h = jnp.dot(h, w3.astype(bf16), preferred_element_type=f32) + b3
    h = jnp.maximum(h, 0.0).astype(bf16)
    logits = jnp.dot(h, w4.astype(bf16), preferred_element_type=f32) + b4
    return jax.nn.log_softmax(logits, axis=1)


if __name__ == "__main__":
    key = jax.random.PRNGKey(0)
    kx, kp = jax.random.split(key)
    B = 256                       # two grid steps at the capped tile -> megacore-friendly
    x = jax.random.normal(kx, (B, IN_DIM), jnp.float32)
    params = init_params(kp)
    prepared = prepare_params(params)          # one-time weight prep (hoisted)

    fwd = jax.jit(functools.partial(net_forward, tb=512))
    out = jax.block_until_ready(fwd(x, prepared))
    assert out.shape == (B, OUT_DIM)

    # Tight check against a reference using the identical bf16/f32 data path.
    ref16 = reference_forward_bf16(x, params)
    assert jnp.allclose(out, ref16, atol=2e-4, rtol=2e-4), \
        float(jnp.max(jnp.abs(out - ref16)))

    # Semantic sanity vs. the full-f32 PyTorch-equivalent forward.
    ref32 = reference_forward_f32(x, params)
    assert jnp.allclose(out, ref32, atol=1e-1, rtol=5e-2), \
        float(jnp.max(jnp.abs(out - ref32)))

    # log-probabilities must exponentiate-and-sum to 1 over the 10 classes.
    assert jnp.allclose(jnp.exp(out).sum(axis=1), 1.0, atol=1e-5)

    print("KERNEL_OK")
</pallas_src>

<mosaic_0001>
module attributes {stable_mosaic.version = 11 : i64} {
  func.func @mlp_kernel(%arg0: i32, %arg1: memref<128x784xf32, #tpu.memory_space<vmem>>, %arg2: memref<784x128xbf16, #tpu.memory_space<vmem>>, %arg3: memref<3x128x128xbf16, #tpu.memory_space<vmem>>, %arg4: memref<4x128xf32, #tpu.memory_space<vmem>>, %arg5: memref<16x128xf32, #tpu.memory_space<vmem>>) attributes {dimension_semantics = [#tpu.dimension_semantics<parallel>], iteration_bounds = array<i64: 2>, scalar_prefetch = 0 : i64, scratch_operands = 0 : i64, tpu.core_type = #tpu.core_type<tc>, window_params = [{transform_indices = @transform_0, window_bounds = array<i64: 128, 784>}, {pipeline_mode = #tpu.pipeline_mode<synchronous>, transform_indices = @transform_1, window_bounds = array<i64: 784, 128>}, {pipeline_mode = #tpu.pipeline_mode<synchronous>, transform_indices = @transform_2, window_bounds = array<i64: 3, 128, 128>}, {pipeline_mode = #tpu.pipeline_mode<synchronous>, transform_indices = @transform_3, window_bounds = array<i64: 4, 128>}, {transform_indices = @transform_4, window_bounds = array<i64: 16, 128>}]} {
    %c0 = arith.constant 0 : index
    %c0_0 = arith.constant 0 : index
    %0 = vector.load %arg1[%c0, %c0_0] : memref<128x784xf32, #tpu.memory_space<vmem>>, vector<128x784xf32>
    %1 = arith.truncf %0 : vector<128x784xf32> to vector<128x784xbf16>
    %c0_1 = arith.constant 0 : index
    %c0_2 = arith.constant 0 : index
    %2 = vector.load %arg2[%c0_1, %c0_2] : memref<784x128xbf16, #tpu.memory_space<vmem>>, vector<784x128xbf16>
    %cst = arith.constant dense<0.000000e+00> : vector<128x128xf32>
    %3 = tpu.matmul %1, %2, %cst {dimension_numbers = #tpu.dot_dimension_numbers<[1], [0], [0], [1], [0, 0, 1, 1], [], []>} : vector<128x784xbf16>, vector<784x128xbf16>, vector<128x128xf32> -> vector<128x128xf32>
    %c0_3 = arith.constant 0 : index
    %c0_4 = arith.constant 0 : index
    %4 = vector.load %arg4[%c0_3, %c0_4] : memref<4x128xf32, #tpu.memory_space<vmem>>, vector<1x128xf32>
    %5 = vector.broadcast %4 : vector<1x128xf32> to vector<128x128xf32>
    %6 = arith.addf %3, %5 : vector<128x128xf32>
    %cst_5 = arith.constant 0.000000e+00 : f32
    %7 = vector.broadcast %cst_5 : f32 to vector<128x128xf32>
    %8 = arith.maximumf %6, %7 : vector<128x128xf32>
    %9 = arith.truncf %8 : vector<128x128xf32> to vector<128x128xbf16>
    %c0_6 = arith.constant 0 : index
    %c0_7 = arith.constant 0 : index
    %c0_8 = arith.constant 0 : index
    %10 = vector.load %arg3[%c0_6, %c0_7, %c0_8] : memref<3x128x128xbf16, #tpu.memory_space<vmem>>, vector<1x128x128xbf16>
    %11 = vector.shape_cast %10 : vector<1x128x128xbf16> to vector<128x128xbf16>
    %cst_9 = arith.constant dense<0.000000e+00> : vector<128x128xf32>
    %12 = tpu.matmul %9, %11, %cst_9 {dimension_numbers = #tpu.dot_dimension_numbers<[1], [0], [0], [1], [0, 0, 1, 1], [], []>} : vector<128x128xbf16>, vector<128x128xbf16>, vector<128x128xf32> -> vector<128x128xf32>
    %c1 = arith.constant 1 : index
    %c0_10 = arith.constant 0 : index
    %13 = vector.load %arg4[%c1, %c0_10] : memref<4x128xf32, #tpu.memory_space<vmem>>, vector<1x128xf32>
    %14 = vector.broadcast %13 : vector<1x128xf32> to vector<128x128xf32>
    %15 = arith.addf %12, %14 : vector<128x128xf32>
    %cst_11 = arith.constant 0.000000e+00 : f32
    %16 = vector.broadcast %cst_11 : f32 to vector<128x128xf32>
    %17 = arith.maximumf %15, %16 : vector<128x128xf32>
    %18 = arith.truncf %17 : vector<128x128xf32> to vector<128x128xbf16>
    %c1_12 = arith.constant 1 : index
    %c0_13 = arith.constant 0 : index
    %c0_14 = arith.constant 0 : index
    %19 = vector.load %arg3[%c1_12, %c0_13, %c0_14] : memref<3x128x128xbf16, #tpu.memory_space<vmem>>, vector<1x128x128xbf16>
    %20 = vector.shape_cast %19 : vector<1x128x128xbf16> to vector<128x128xbf16>
    %cst_15 = arith.constant dense<0.000000e+00> : vector<128x128xf32>
    %21 = tpu.matmul %18, %20, %cst_15 {dimension_numbers = #tpu.dot_dimension_numbers<[1], [0], [0], [1], [0, 0, 1, 1], [], []>} : vector<128x128xbf16>, vector<128x128xbf16>, vector<128x128xf32> -> vector<128x128xf32>
    %c2 = arith.constant 2 : index
    %c0_16 = arith.constant 0 : index
    %22 = vector.load %arg4[%c2, %c0_16] : memref<4x128xf32, #tpu.memory_space<vmem>>, vector<1x128xf32>
    %23 = vector.broadcast %22 : vector<1x128xf32> to vector<128x128xf32>
    %24 = arith.addf %21, %23 : vector<128x128xf32>
    %cst_17 = arith.constant 0.000000e+00 : f32
    %25 = vector.broadcast %cst_17 : f32 to vector<128x128xf32>
    %26 = arith.maximumf %24, %25 : vector<128x128xf32>
    %27 = arith.truncf %26 : vector<128x128xf32> to vector<128x128xbf16>
    %c2_18 = arith.constant 2 : index
    %c0_19 = arith.constant 0 : index
    %c0_20 = arith.constant 0 : index
    %28 = vector.load %arg3[%c2_18, %c0_19, %c0_20] : memref<3x128x128xbf16, #tpu.memory_space<vmem>>, vector<1x128x128xbf16>
    %29 = vector.shape_cast %28 : vector<1x128x128xbf16> to vector<128x128xbf16>
    %cst_21 = arith.constant dense<0.000000e+00> : vector<128x128xf32>
    %30 = tpu.matmul %27, %29, %cst_21 {dimension_numbers = #tpu.dot_dimension_numbers<[1], [0], [0], [1], [0, 0, 1, 1], [], []>} : vector<128x128xbf16>, vector<128x128xbf16>, vector<128x128xf32> -> vector<128x128xf32>
    %c3 = arith.constant 3 : index
    %c0_22 = arith.constant 0 : index
    %31 = vector.load %arg4[%c3, %c0_22] : memref<4x128xf32, #tpu.memory_space<vmem>>, vector<1x128xf32>
    %32 = vector.broadcast %31 : vector<1x128xf32> to vector<128x128xf32>
    %33 = arith.addf %30, %32 : vector<128x128xf32>
    %cst_23 = arith.constant dense<0xFF800000> : vector<128xf32>
    %34 = vector.multi_reduction <maximumf>, %33, %cst_23 [1] : vector<128x128xf32> to vector<128xf32>
    %35 = vector.shape_cast %34 : vector<128xf32> to vector<128x1xf32>
    %36 = vector.broadcast %35 : vector<128x1xf32> to vector<128x128xf32>
    %37 = arith.subf %33, %36 : vector<128x128xf32>
    %38 = math.exp %37 : vector<128x128xf32>
    %cst_24 = arith.constant dense<0.000000e+00> : vector<128xf32>
    %39 = vector.multi_reduction <add>, %38, %cst_24 [1] : vector<128x128xf32> to vector<128xf32>
    %40 = vector.shape_cast %39 : vector<128xf32> to vector<128x1xf32>
    %41 = math.log %40 : vector<128x1xf32>
    %42 = vector.broadcast %41 : vector<128x1xf32> to vector<128x128xf32>
    %43 = arith.subf %37, %42 : vector<128x128xf32>
    %44 = tpu.transpose %43, [1, 0] : vector<128x128xf32> -> vector<128x128xf32>
    %45 = vector.extract_strided_slice %44 {offsets = [0, 0], sizes = [16, 128], strides = [1, 1]} : vector<128x128xf32> to vector<16x128xf32>
    %c0_25 = arith.constant 0 : index
    %c0_26 = arith.constant 0 : index
    %46 = vector.load %arg5[%c0_25, %c0_26] : memref<16x128xf32, #tpu.memory_space<vmem>>, vector<16x128xf32>
    tpu.vector_store %arg5[%c0_25, %c0_26], %45 {strides = array<i32>} : memref<16x128xf32, #tpu.memory_space<vmem>>, vector<16x128xf32>,
    return
  }
  func.func @transform_0(%arg0: i32) -> (i32, i32) {
    %c0_i32 = arith.constant 0 : i32
    %c0_i32_0 = arith.constant 0 : i32
    return %arg0, %c0_i32 : i32, i32
  }
  func.func @transform_1(%arg0: i32) -> (i32, i32) {
    %c0_i32 = arith.constant 0 : i32
    %c0_i32_0 = arith.constant 0 : i32
    %c0_i32_1 = arith.constant 0 : i32
    return %c0_i32, %c0_i32_0 : i32, i32
  }
  func.func @transform_2(%arg0: i32) -> (i32, i32, i32) {
    %c0_i32 = arith.constant 0 : i32
    %c0_i32_0 = arith.constant 0 : i32
    %c0_i32_1 = arith.constant 0 : i32
    %c0_i32_2 = arith.constant 0 : i32
    return %c0_i32, %c0_i32_0, %c0_i32_1 : i32, i32, i32
  }
  func.func @transform_3(%arg0: i32) -> (i32, i32) {
    %c0_i32 = arith.constant 0 : i32
    %c0_i32_0 = arith.constant 0 : i32
    %c0_i32_1 = arith.constant 0 : i32
    return %c0_i32, %c0_i32_0 : i32, i32
  }
  func.func @transform_4(%arg0: i32) -> (i32, i32) {
    %c0_i32 = arith.constant 0 : i32
    %c0_i32_0 = arith.constant 0 : i32
    return %c0_i32, %arg0 : i32, i32
  }
}

</mosaic_0001>

<bundles_post_ra>
// kernel: net_forward.1
= control target key start
LH: loop header
LB: loop body
LE: loop exit
PB: predicated region body
PF: predicated region fallthrough
CT: control target
= control target key end

     0   :  { %s2412_s15 = smov 0   ;;  %s2414_s16 = smov 0   ;;  %s3069_s0 = inlined_call_operand.vmem [shape: f32[256,784], index: 0, kind: input, shape index: {}]   ;;  %s3070_s1 = inlined_call_operand.vmem [shape: bf16[784,128], index: 1, kind: input, shape index: {}]   ;;  %s3071_s2 = inlined_call_operand.vmem [shape: bf16[3,128,128], index: 2, kind: input, shape index: {}]   ;;  %s3072_s3 = inlined_call_operand.vmem [shape: f32[4,128], index: 3, kind: input, shape index: {}]   ;;  %s3073_s4 = inlined_call_operand.vmem [shape: f32[16,256], index: 4, kind: output, shape index: {}]  }
   0x1   :  { %s2416_s17 = smov 0  }
   0x2 LB: > { %s2425_s18 = sadd.s32 4294967295, %s2385_s17   ;;  %s2427_s19 = sadd.s32 1, %s2385_s17   ;;  %s2385_s17 = sphi %s2416_s17, %s3077_s17   ;;  %s2381_s16 = sphi %s2414_s16, %s3076_s16   ;;  %s2377_s15 = sphi %s2412_s15, %s3075_s15  }
   0x3   : > { %s107_s20 = ssub.s32 %s2385_s17, %s2427_s19  ;;  %s110_s21 = sadd.s32 1, %s2381_s16 }
   0x4   : > { %p108_p0 = scmp.eq.s32.totalorder %s107_s20, 0  ;;  %p120_p1 = scmp.ne.s32.totalorder %s2381_s16, %s2377_s15 }
   0x5   : > { %p121_p2 = scmp.eq.s32.totalorder %s2425_s18, 1  ;;  %p1841_p3 = scmp.ge.s32.totalorder %s2385_s17, 1 }
   0x6   : > { %s2435_s22 = scalar_select %p108_p0, %s2381_s16, %s110_s21  }
   0x7   : > { %p2437_p4 = por %p121_p2, %p120_p1  ;;  %p164_p5 = scmp.lt.s32.totalorder %s2385_s17, 3 }
   0x9   : > { %p165_p6 = pnand %p1841_p3, %p164_p5 }
   0xa   : > { %s1843_s10 = sshll.u32 (!%p165_p6), %s2425_s18, 4  ;;  %s187_s27 = sand.u32 (!%p165_p6), 1, %s2377_s15  }
   0xb   : > { %168 = sbr.rel (%p165_p6) target bundleno = 1243 (0x4db), region = 36  ;;  %p191_p7 = scmp.lt.s32.totalorder (!%p165_p6), %s1843_s10, 31 }
   0xc   : > { %s1842_s28 = sshll.u32 (!%p165_p6), %s187_s27, 4 }
  0x10   : > { %v2188_v0 = vld [vmem:[%s3070_s1 + $0x38] sm:$0xff]  ;;  %v2187_v2 = vld [vmem:[%s3070_s1 + $0x30] sm:$0xff]  ;;  %v2186_v4 = vld [vmem:[%s3070_s1 + $0x28] sm:$0xff]  ;;  %s3079_s10 = smov (!%p191_p7, %s1843_s10), 31  ;;  %vm760_vm0 = vcmask 130048  }
  0x11   : > { %v2196_v1 = vld [vmem:[%s3070_s1 + $0x78] sm:$0xff]  ;;  %2254 = vmatpush.bf16.msra.mxu2 %v2188_v0  ;;  %v2195_v3 = vld [vmem:[%s3070_s1 + $0x70] sm:$0xff]  ;;  %785 = vmatpush.bf16.msra.mxu0 %v2188_v0  ;;  %v2194_v5 = vld [vmem:[%s3070_s1 + $0x68] sm:$0xff]  ;;  %s2270_s29 = smul.u32 56, %s3079_s10 }
  0x12   : > { %2262 = vmatpush.bf16.msra.mxu3 %v2196_v1  ;;  %834 = vmatpush.bf16.msra.mxu1 %v2196_v1  ;;  %v2185_v6 = vld [vmem:[%s3070_s1 + $0x20] sm:$0xff]  ;;  %v2184_v8 = vld [vmem:[%s3070_s1 + $0x18] sm:$0xff]  ;;  %v2183_v10 = vld [vmem:[%s3070_s1 + $0x10] sm:$0xff] }
  0x13   : > { %v2193_v7 = vld [vmem:[%s3070_s1 + $0x60] sm:$0xff]  ;;  %v2192_v9 = vld [vmem:[%s3070_s1 + $0x58] sm:$0xff]  ;;  %v2191_v11 = vld [vmem:[%s3070_s1 + $0x50] sm:$0xff]  ;;  %s2487_s11 = scalar_lea.vmem %s3069_s0, %s2270_s29  ;;  %s2178_s29 = sshll.u32 (%p2437_p4), %s2425_s18, 3 }
  0x14   : > { %v2182_v12 = vld [vmem:[%s3070_s1 + $0x8] sm:$0xff]  ;;  %v2181_v14 = vld [vmem:[%s3070_s1] sm:$0xff]  ;;  %v261_v17 = vld [vmem:[%s2487_s11 + $0x1f8] sm:$0xff]  ;;  %s1749_s6 = scalar_lea.vmem (%p2437_p4), %s3073_s4, %s2178_s29 }
  0x15   : > { %2255 = vmatpush.bf16.msra.mxu2 %v2187_v2  ;;  %786 = vmatpush.bf16.msra.mxu0 %v2187_v2  ;;  %v2190_v13 = vld [vmem:[%s3070_s1 + $0x48] sm:$0xff]  ;;  %v2189_v15 = vld [vmem:[%s3070_s1 + $0x40] sm:$0xff]  ;;  %v2204_v20 = vld [vmem:[%s3070_s1 + $0xb8] sm:$0xff] }
  0x16   : > { %2263 = vmatpush.bf16.msra.mxu3 %v2195_v3  ;;  %835 = vmatpush.bf16.msra.mxu1 %v2195_v3  ;;  %v254_v16 = vld [vmem:[%s2487_s11 + $0x1c0] sm:$0xff]  ;;  %v255_v18 = vld [vmem:[%s2487_s11 + $0x1c8] sm:$0xff]  ;;  %v205_v22 = vld [vmem:[%s2487_s11 + $0x38] sm:$0xff] }
  0x17   : > { %v262_v19 = vld [vmem:[%s2487_s11 + $0x200] sm:$0xff]  ;;  %v199_v23 = vld [vmem:[%s2487_s11 + $0x8] sm:$0xff]  ;;  %v338_v25 = vpack.c.bf16 %v261_v17, %v254_v16  ;;  %v2203_v28 = vld [vmem:[%s3070_s1 + $0xb0] sm:$0xff] }
  0x18   : > { %v198_v21 = vld [vmem:[%s2487_s11] sm:$0xff]  ;;  %v339_v26 = vpack.c.bf16 %v262_v19, %v255_v18  ;;  %v2212_v30 = vld [vmem:[%s3070_s1 + $0xf8] sm:$0xff]  ;;  %v2202_v31 = vld [vmem:[%s3070_s1 + $0xa8] sm:$0xff] }
  0x19   : > { %2256 = vmatpush.bf16.msra.mxu2 %v2186_v4  ;;  %787 = vmatpush.bf16.msra.mxu0 %v2186_v4  ;;  %v206_v24 = vld [vmem:[%s2487_s11 + $0x40] sm:$0xff]  ;;  %v310_v27 = vpack.c.bf16 %v205_v22, %v198_v21  ;;  %v2220_v32 = vld [vmem:[%s3070_s1 + $0x138] sm:$0xff]  ;;  %v2211_v33 = vld [vmem:[%s3070_s1 + $0xf0] sm:$0xff] }
  0x1a   : > { %2264 = vmatpush.bf16.msra.mxu3 %v2194_v5  ;;  %836 = vmatpush.bf16.msra.mxu1 %v2194_v5  ;;  %v311_v29 = vpack.c.bf16 %v206_v24, %v199_v23  ;;  %v2228_v34 = vld [vmem:[%s3070_s1 + $0x178] sm:$0xff]  ;;  %v2219_v35 = vld [vmem:[%s3070_s1 + $0x130] sm:$0xff]  ;;  %v2201_v36 = vld [vmem:[%s3070_s1 + $0xa0] sm:$0xff] }
  0x1b   : > { %v2210_v37 = vld [vmem:[%s3070_s1 + $0xe8] sm:$0xff]  ;;  %v268_v38 = vld [vmem:[%s2487_s11 + $0x230] sm:$0xff]  ;;  %v269_v40 = vld [vmem:[%s2487_s11 + $0x238] sm:$0xff] }
  0x1c   : > { %v275_v39 = vld [vmem:[%s2487_s11 + $0x268] sm:$0xff]  ;;  %v276_v41 = vld [vmem:[%s2487_s11 + $0x270] sm:$0xff]  ;;  %v2200_v44 = vld [vmem:[%s3070_s1 + $0x98] sm:$0xff] }
  0x1d   : > { %2257 = vmatpush.bf16.msra.mxu2 %v2185_v6  ;;  %788 = vmatpush.bf16.msra.mxu0 %v2185_v6  ;;  %v212_v42 = vld [vmem:[%s2487_s11 + $0x70] sm:$0xff]  ;;  %v219_v43 = vld [vmem:[%s2487_s11 + $0xa8] sm:$0xff]  ;;  %v213_v45 = vld [vmem:[%s2487_s11 + $0x78] sm:$0xff]  ;;  %v345_v48 = vpack.c.bf16 %v275_v39, %v268_v38  ;;  %v346_v49 = vpack.c.bf16 %v276_v41, %v269_v40 }
  0x1e   : > { %2265 = vmatpush.bf16.msra.mxu3 %v2193_v7  ;;  %837 = vmatpush.bf16.msra.mxu1 %v2193_v7  ;;  %v220_v46 = vld [vmem:[%s2487_s11 + $0xb0] sm:$0xff]  ;;  %v2209_v47 = vld [vmem:[%s3070_s1 + $0xe0] sm:$0xff]  ;;  %v317_v50 = vpack.c.bf16 %v219_v43, %v212_v42  ;;  %v2208_v54 = vld [vmem:[%s3070_s1 + $0xd8] sm:$0xff] }
  0x1f   : > { %v318_v51 = vpack.c.bf16 %v220_v46, %v213_v45  ;;  %v2199_v52 = vld [vmem:[%s3070_s1 + $0x90] sm:$0xff]  ;;  %v2218_v55 = vld [vmem:[%s3070_s1 + $0x128] sm:$0xff]  ;;  %v2217_v59 = vld [vmem:[%s3070_s1 + $0x120] sm:$0xff] }
  0x20   : > { %v2227_v53 = vld [vmem:[%s3070_s1 + $0x170] sm:$0xff]  ;;  %v2226_v56 = vld [vmem:[%s3070_s1 + $0x168] sm:$0xff]  ;;  %v2225_v60 = vld [vmem:[%s3070_s1 + $0x160] sm:$0xff] }
  0x21   : > { %2258 = vmatpush.bf16.msra.mxu2 %v2184_v8  ;;  %789 = vmatpush.bf16.msra.mxu0 %v2184_v8  ;;  %v2198_v57 = vld [vmem:[%s3070_s1 + $0x88] sm:$0xff]  ;;  %v2207_v58 = vld [vmem:[%s3070_s1 + $0xd0] sm:$0xff]  ;;  %v2197_v61 = vld [vmem:[%s3070_s1 + $0x80] sm:$0xff] }
  0x22   : > { %2266 = vmatpush.bf16.msra.mxu3 %v2192_v9  ;;  %838 = vmatpush.bf16.msra.mxu1 %v2192_v9  ;;  %v2206_v62 = vld [vmem:[%s3070_s1 + $0xc8] sm:$0xff]  ;;  %v2216_v63 = vld [vmem:[%s3070_s1 + $0x118] sm:$0xff]  ;;  %v282_v0 = vld [vmem:[%s2487_s11 + $0x2a0] sm:$0xff] }
  0x23   : > { %v289_v1 = vld [vmem:[%s2487_s11 + $0x2d8] sm:$0xff]  ;;  %v283_v2 = vld [vmem:[%s2487_s11 + $0x2a8] sm:$0xff]  ;;  %v290_v3 = vld [vmem:[%s2487_s11 + $0x2e0] sm:$0xff] }
  0x24   : > { %v2224_v4 = vld [vmem:[%s3070_s1 + $0x158] sm:$0xff]  ;;  %v226_v5 = vld [vmem:[%s2487_s11 + $0xe0] sm:$0xff]  ;;  %v227_v7 = vld [vmem:[%s2487_s11 + $0xe8] sm:$0xff] }
  0x25   : > { %2259 = vmatpush.bf16.msra.mxu2 %v2183_v10  ;;  %790 = vmatpush.bf16.msra.mxu0 %v2183_v10  ;;  %v233_v6 = vld [vmem:[%s2487_s11 + $0x118] sm:$0xff]  ;;  %v234_v8 = vld [vmem:[%s2487_s11 + $0x120] sm:$0xff]  ;;  %v2215_v10 = vld [vmem:[%s3070_s1 + $0x110] sm:$0xff] }
  0x26   : > { %2267 = vmatpush.bf16.msra.mxu3 %v2191_v11  ;;  %839 = vmatpush.bf16.msra.mxu1 %v2191_v11  ;;  %v2205_v9 = vld [vmem:[%s3070_s1 + $0xc0] sm:$0xff]  ;;  %v352_v11 = vpack.c.bf16 %v289_v1, %v282_v0  ;;  %v2214_v17 = vld [vmem:[%s3070_s1 + $0x108] sm:$0xff]  ;;  %v296_v21 = vld [vmem:[%s2487_s11 + $0x310] sm:$0xff] }
  0x27   : > { %v2229_v16 = vld [vmem:[%s3070_s1 + $0x180] sm:$0xff]  ;;  %v2222_v18 = vld [vmem:[%s3070_s1 + $0x148] sm:$0xff]  ;;  %v297_v23 = vld [vmem:[%s2487_s11 + $0x318] sm:$0xff] }
  0x28   : > { %v2213_v19 = vld [vmem:[%s3070_s1 + $0x100] sm:$0xff]  ;;  %v303_v22 = vld [vmem:[%s2487_s11 + $0x348] sm:$0xff]  ;;  %v304_v24 = vld [vmem:[%s2487_s11 + $0x350] sm:$0xff] }
  0x29   : > { %2260 = vmatpush.bf16.msra.mxu2 %v2182_v12  ;;  %791 = vmatpush.bf16.msra.mxu0 %v2182_v12  ;;  %v353_v12 = vpack.c.bf16 %v290_v3, %v283_v2  ;;  %v209_v38 = vld [vmem:[%s2487_s11 + $0x58] sm:$0xff]  ;;  %v203_v39 = vld [vmem:[%s2487_s11 + $0x28] sm:$0xff]  ;;  %v210_v40 = vld [vmem:[%s2487_s11 + $0x60] sm:$0xff] }
  0x2a   : > { %2268 = vmatpush.bf16.msra.mxu3 %v2190_v13  ;;  %840 = vmatpush.bf16.msra.mxu1 %v2190_v13  ;;  %v324_v13 = vpack.c.bf16 %v233_v6, %v226_v5  ;;  %v214_v45 = vld [vmem:[%s2487_s11 + $0x80] sm:$0xff]  ;;  %v221_v46 = vld [vmem:[%s2487_s11 + $0xb8] sm:$0xff] }
  0x2b   : > { %v238_v0 = vld [vmem:[%s2487_s11 + $0x140] sm:$0xff]  ;;  %v249_v6 = vld [vmem:[%s2487_s11 + $0x198] sm:$0xff] }
  0x2c   : > { %v242_v5 = vld [vmem:[%s2487_s11 + $0x160] sm:$0xff] }
  0x2d   : > { %2261 = vmatpush.bf16.msra.mxu2 %v2181_v14  ;;  %792 = vmatpush.bf16.msra.mxu0 %v2181_v14  ;;  %v325_v14 = vpack.c.bf16 %v234_v8, %v227_v7  ;;  %v243_v7 = vld [vmem:[%s2487_s11 + $0x168] sm:$0xff]  ;;  %v250_v8 = vld [vmem:[%s2487_s11 + $0x1a0] sm:$0xff] }
  0x2e   : > { %2269 = vmatpush.bf16.msra.mxu3 %v2189_v15  ;;  %841 = vmatpush.bf16.msra.mxu1 %v2189_v15  ;;  %v2223_v15 = vld [vmem:[%s3070_s1 + $0x150] sm:$0xff] }
  0x30   : > { %813 = vmatmul.bf16.vlgmr.msra.gmra.mxu2 %v338_v25  ;;  %793 = vmatmul.bf16.vlgmr.msra.gmra.mxu0 %v310_v27  ;;  %v240_v25 = vld [vmem:[%s2487_s11 + $0x150] sm:$0xff]  ;;  %v241_v27 = vld [vmem:[%s2487_s11 + $0x158] sm:$0xff] }
  0x31   : > { %883 = vmatpush.bf16.msrb.mxu2 %v2204_v20  ;;  %862 = vmatmul.bf16.vlgmr.msra.gmra.mxu3 %v339_v26  ;;  %v2221_v20 = vld [vmem:[%s3070_s1 + $0x140] sm:$0xff]  ;;  %v247_v26 = vld [vmem:[%s2487_s11 + $0x188] sm:$0xff] }
  0x32   : > { %842 = vmatmul.bf16.vlgmr.msra.gmra.mxu1 %v311_v29  ;;  %932 = vmatpush.bf16.msrb.mxu3 %v2212_v30  ;;  %v359_v29 = vpack.c.bf16 %v303_v22, %v296_v21  ;;  %v360_v30 = vpack.c.bf16 %v304_v24, %v297_v23  ;;  %v258_v21 = vld [vmem:[%s2487_s11 + $0x1e0] sm:$0xff]  ;;  %v265_v22 = vld [vmem:[%s2487_s11 + $0x218] sm:$0xff]  ;;  %v259_v23 = vld [vmem:[%s2487_s11 + $0x1e8] sm:$0xff] }
  0x33   : > { %981 = vmatpush.bf16.msrb.mxu0 %v2220_v32  ;;  %1030 = vmatpush.bf16.msrb.mxu1 %v2228_v34  ;;  %v207_v34 = vld [vmem:[%s2487_s11 + $0x48] sm:$0xff]  ;;  %v266_v24 = vld [vmem:[%s2487_s11 + $0x220] sm:$0xff] }
  0x35   : > { %884 = vmatpush.bf16.msrb.mxu2 %v2203_v28  ;;  %v248_v28 = vld [vmem:[%s2487_s11 + $0x190] sm:$0xff] }
  0x36   : > { %933 = vmatpush.bf16.msrb.mxu3 %v2211_v33  ;;  %v332_v32 = vpack.c.bf16 %v248_v28, %v241_v27  ;;  %v200_v33 = vld [vmem:[%s2487_s11 + $0x10] sm:$0xff]  ;;  %v2669_v27 = vld [vmem:[%s3072_s3] ss:$0 sm:$0xff]  ;;  %v342_v28 = vpack.c.bf16 %v265_v22, %v258_v21 }
  0x37   : > { %982 = vmatpush.bf16.msrb.mxu0 %v2219_v35  ;;  %1031 = vmatpush.bf16.msrb.mxu1 %v2227_v53  ;;  %v201_v35 = vld [vmem:[%s2487_s11 + $0x18] sm:$0xff]  ;;  %v312_v41 = vpack.c.bf16 %v207_v34, %v200_v33  ;;  %v319_v53 = vpack.c.bf16 %v221_v46, %v214_v45  ;;  %v279_v45 = vld [vmem:[%s2487_s11 + $0x288] sm:$0xff] }
  0x39   : > { %885 = vmatpush.bf16.msrb.mxu2 %v2202_v31  ;;  %v331_v31 = vpack.c.bf16 %v247_v26, %v240_v25 }
  0x3a   : > { %934 = vmatpush.bf16.msrb.mxu3 %v2210_v37  ;;  %v202_v37 = vld [vmem:[%s2487_s11 + $0x20] sm:$0xff] }
  0x3b   : > { %983 = vmatpush.bf16.msrb.mxu0 %v2218_v55  ;;  %1032 = vmatpush.bf16.msrb.mxu1 %v2226_v56  ;;  %v314_v43 = vpack.c.bf16 %v209_v38, %v202_v37 }
  0x3d   : > { %886 = vmatpush.bf16.msrb.mxu2 %v2201_v36  ;;  %v208_v36 = vld [vmem:[%s2487_s11 + $0x50] sm:$0xff] }
  0x3e   : > { %935 = vmatpush.bf16.msrb.mxu3 %v2209_v47  ;;  %v313_v42 = vpack.c.bf16 %v208_v36, %v201_v35  ;;  %v215_v47 = vld [vmem:[%s2487_s11 + $0x88] sm:$0xff] }
  0x3f   : > { %984 = vmatpush.bf16.msrb.mxu0 %v2217_v59  ;;  %1033 = vmatpush.bf16.msrb.mxu1 %v2225_v60  ;;  %v229_v59 = vld [vmem:[%s2487_s11 + $0xf8] sm:$0xff]  ;;  %v236_v60 = vld [vmem:[%s2487_s11 + $0x130] sm:$0xff] }
  0x40   : > { %818 = vmatmul.bf16.gmra.mxu2 %v345_v48  ;;  %798 = vmatmul.bf16.gmra.mxu0 %v317_v50  ;;  %v222_v48 = vld [vmem:[%s2487_s11 + $0xc0] sm:$0xff]  ;;  %v223_v50 = vld [vmem:[%s2487_s11 + $0xc8] sm:$0xff]  ;;  %v327_v2 = vpack.c.bf16 %v236_v60, %v229_v59 }
  0x41   : > { %887 = vmatpush.bf16.msrb.mxu2 %v2200_v44  ;;  %867 = vmatmul.bf16.gmra.mxu3 %v346_v49  ;;  %v315_v44 = vpack.c.bf16 %v210_v40, %v203_v39  ;;  %v216_v49 = vld [vmem:[%s2487_s11 + $0x90] sm:$0xff]  ;;  %v270_v40 = vld [vmem:[%s2487_s11 + $0x240] sm:$0xff] }
  0x42   : > { %847 = vmatmul.bf16.gmra.mxu1 %v318_v51  ;;  %936 = vmatpush.bf16.msrb.mxu3 %v2208_v54  ;;  %v217_v51 = vld [vmem:[%s2487_s11 + $0x98] sm:$0xff]  ;;  %v320_v54 = vpack.c.bf16 %v222_v48, %v215_v47  ;;  %v321_v55 = vpack.c.bf16 %v223_v50, %v216_v49  ;;  %v280_v49 = vld [vmem:[%s2487_s11 + $0x290] sm:$0xff] }
  0x43   : > { %985 = vmatpush.bf16.msrb.mxu0 %v2216_v63  ;;  %1034 = vmatpush.bf16.msrb.mxu1 %v2224_v4  ;;  %v231_v63 = vld [vmem:[%s2487_s11 + $0x108] sm:$0xff]  ;;  %v273_v48 = vld [vmem:[%s2487_s11 + $0x258] sm:$0xff] }
  0x44   : > { %v329_v4 = vpack.c.bf16 %v238_v0, %v231_v63 }
  0x45   : > { %888 = vmatpush.bf16.msrb.mxu2 %v2199_v52  ;;  %v224_v52 = vld [vmem:[%s2487_s11 + $0xd0] sm:$0xff] }
  0x46   : > { %937 = vmatpush.bf16.msrb.mxu3 %v2207_v58  ;;  %v322_v56 = vpack.c.bf16 %v224_v52, %v217_v51  ;;  %v235_v58 = vld [vmem:[%s2487_s11 + $0x128] sm:$0xff] }
  0x47   : > { %986 = vmatpush.bf16.msrb.mxu0 %v2215_v10  ;;  %1035 = vmatpush.bf16.msrb.mxu1 %v2223_v15  ;;  %v251_v10 = vld [vmem:[%s2487_s11 + $0x1a8] sm:$0xff] }
  0x49   : > { %889 = vmatpush.bf16.msrb.mxu2 %v2198_v57  ;;  %v228_v57 = vld [vmem:[%s2487_s11 + $0xf0] sm:$0xff] }
  0x4a   : > { %938 = vmatpush.bf16.msrb.mxu3 %v2206_v62  ;;  %v237_v62 = vld [vmem:[%s2487_s11 + $0x138] sm:$0xff]  ;;  %v326_v1 = vpack.c.bf16 %v235_v58, %v228_v57 }
  0x4b   : > { %987 = vmatpush.bf16.msrb.mxu0 %v2214_v17  ;;  %1036 = vmatpush.bf16.msrb.mxu1 %v2222_v18  ;;  %v256_v17 = vld [vmem:[%s2487_s11 + $0x1d0] sm:$0xff]  ;;  %v263_v18 = vld [vmem:[%s2487_s11 + $0x208] sm:$0xff] }
  0x4c   : > { %v340_v25 = vpack.c.bf16 %v263_v18, %v256_v17 }
  0x4d   : > { %890 = vmatpush.bf16.msrb.mxu2 %v2197_v61  ;;  %v230_v61 = vld [vmem:[%s2487_s11 + $0x100] sm:$0xff] }
  0x4e   : > { %939 = vmatpush.bf16.msrb.mxu3 %v2205_v9  ;;  %v328_v3 = vpack.c.bf16 %v237_v62, %v230_v61  ;;  %v244_v9 = vld [vmem:[%s2487_s11 + $0x170] sm:$0xff] }
  0x4f   : > { %988 = vmatpush.bf16.msrb.mxu0 %v2213_v19  ;;  %1037 = vmatpush.bf16.msrb.mxu1 %v2221_v20  ;;  %v335_v15 = vpack.c.bf16 %v251_v10, %v244_v9  ;;  %v257_v19 = vld [vmem:[%s2487_s11 + $0x1d8] sm:$0xff]  ;;  %v264_v20 = vld [vmem:[%s2487_s11 + $0x210] sm:$0xff]  ;;  %v287_v9 = vld [vmem:[%s2487_s11 + $0x2c8] sm:$0xff] }
  0x50   : > { %823 = vmatmul.bf16.gmra.mxu2 %v352_v11  ;;  %803 = vmatmul.bf16.gmra.mxu0 %v324_v13  ;;  %v245_v11 = vld [vmem:[%s2487_s11 + $0x178] sm:$0xff]  ;;  %v333_v13 = vpack.c.bf16 %v249_v6, %v242_v5  ;;  %v341_v26 = vpack.c.bf16 %v264_v20, %v257_v19  ;;  %v286_v5 = vld [vmem:[%s2487_s11 + $0x2c0] sm:$0xff] }
  0x51   : > { %872 = vmatmul.bf16.gmra.mxu3 %v353_v12  ;;  %1086 = vmatpush.bf16.msra.mxu2 %v2229_v16  ;;  %v252_v12 = vld [vmem:[%s2487_s11 + $0x1b0] sm:$0xff]  ;;  %v293_v6 = vld [vmem:[%s2487_s11 + $0x2f8] sm:$0xff]  ;;  %v294_v10 = vld [vmem:[%s2487_s11 + $0x300] sm:$0xff] }
  0x52   : > { %852 = vmatmul.bf16.gmra.mxu1 %v325_v14  ;;  %v334_v14 = vpack.c.bf16 %v250_v8, %v243_v7  ;;  %v336_v16 = vpack.c.bf16 %v252_v12, %v245_v11 }
  0x60   : > { %828 = vmatmul.bf16.gmra.mxu2 %v359_v29  ;;  %808 = vmatmul.bf16.gmra.mxu0 %v331_v31 }
  0x61   : > { %877 = vmatmul.bf16.gmra.mxu3 %v360_v30  ;;  %v343_v30 = vpack.c.bf16 %v266_v24, %v259_v23 }
  0x62   : > { %857 = vmatmul.bf16.gmra.mxu1 %v332_v32 }
  0x70   : > { %891 = vmatmul.bf16.vlgmr.msrb.gmra.mxu2 %v312_v41  ;;  %989 = vmatmul.bf16.vlgmr.msrb.gmra.mxu0 %v314_v43  ;;  %v277_v41 = vld [vmem:[%s2487_s11 + $0x278] sm:$0xff]  ;;  %v278_v43 = vld [vmem:[%s2487_s11 + $0x280] sm:$0xff] }
  0x71   : > { %940 = vmatmul.bf16.vlgmr.msrb.gmra.mxu3 %v313_v42  ;;  %v271_v42 = vld [vmem:[%s2487_s11 + $0x248] sm:$0xff]  ;;  %v347_v51 = vpack.c.bf16 %v277_v41, %v270_v40  ;;  %v308_v40 = vld [vmem:[%s2487_s11 + $0x370] sm:$0xff] }
  0x72   : > { %1038 = vmatmul.bf16.vlgmr.msrb.gmra.mxu1 %v315_v44  ;;  %v272_v44 = vld [vmem:[%s2487_s11 + $0x250] sm:$0xff]  ;;  %v348_v52 = vpack.c.bf16 %v278_v43, %v271_v42 }
  0x80   : > { %896 = vmatmul.bf16.gmra.mxu2 %v319_v53  ;;  %994 = vmatmul.bf16.gmra.mxu0 %v321_v55  ;;  %v349_v53 = vpack.c.bf16 %v279_v45, %v272_v44  ;;  %v350_v55 = vpack.c.bf16 %v280_v49, %v273_v48 }
  0x81   : > { %945 = vmatmul.bf16.gmra.mxu3 %v320_v54 }
  0x82   : > { %1043 = vmatmul.bf16.gmra.mxu1 %v322_v56 }
  0x90   : > { %901 = vmatmul.bf16.gmra.mxu2 %v326_v1  ;;  %999 = vmatmul.bf16.gmra.mxu0 %v328_v3  ;;  %v284_v1 = vld [vmem:[%s2487_s11 + $0x2b0] sm:$0xff]  ;;  %v285_v3 = vld [vmem:[%s2487_s11 + $0x2b8] sm:$0xff] }
  0x91   : > { %950 = vmatmul.bf16.gmra.mxu3 %v327_v2  ;;  %v291_v2 = vld [vmem:[%s2487_s11 + $0x2e8] sm:$0xff] }
  0x92   : > { %1048 = vmatmul.bf16.gmra.mxu1 %v329_v4  ;;  %v292_v4 = vld [vmem:[%s2487_s11 + $0x2f0] sm:$0xff]  ;;  %v354_v12 = vpack.c.bf16 %v291_v2, %v284_v1 }
  0x93   : > { %v2236_v2 = vld [vmem:[%s3071_s2 + $0x30] sm:$0xff] }
  0xa0   : > { %906 = vmatmul.bf16.gmra.mxu2 %v333_v13  ;;  %1004 = vmatmul.bf16.gmra.mxu0 %v335_v15  ;;  %v355_v13 = vpack.c.bf16 %v292_v4, %v285_v3 }
  0xa1   : > { %955 = vmatmul.bf16.gmra.mxu3 %v334_v14  ;;  %v356_v14 = vpack.c.bf16 %v293_v6, %v286_v5  ;;  %v218_v5 = vld [vmem:[%s2487_s11 + $0xa0] sm:$0xff]  ;;  %v225_v6 = vld [vmem:[%s2487_s11 + $0xd8] sm:$0xff] }
  0xa2   : > { %1053 = vmatmul.bf16.gmra.mxu1 %v336_v16  ;;  %v357_v16 = vpack.c.bf16 %v294_v10, %v287_v9  ;;  %v323_v9 = vpack.c.bf16 %v225_v6, %v218_v5  ;;  %v2235_v10 = vld [vmem:[%s3071_s2 + $0x28] sm:$0xff]  ;;  %v2230_v5 = vld [vmem:[%s3071_s2] sm:$0xff] }
  0xad   : > { %v794_v29 = vpop.f32.mrf.mxu0 }
  0xae   : > { %v795_v31 = vadd.f32 %v2669_v27, %v794_v29  ;;  %v299_v29 = vld [vmem:[%s2487_s11 + $0x328] sm:$0xff] }
  0xaf   : > { %v843_v32 = vpop.f32.mrf.mxu1 }
  0xb0   : > { %911 = vmatmul.bf16.gmra.mxu2 %v340_v25  ;;  %v2672_v33 = vadd.f32 %v843_v32, %v795_v31  ;;  %1009 = vmatmul.bf16.gmra.mxu0 %v342_v28  ;;  %v305_v28 = vld [vmem:[%s2487_s11 + $0x358] sm:$0xff]  ;;  %v300_v31 = vld [vmem:[%s2487_s11 + $0x330] sm:$0xff]  ;;  %v307_v32 = vld [vmem:[%s2487_s11 + $0x368] sm:$0xff] }
  0xb1   : > { %960 = vmatmul.bf16.gmra.mxu3 %v341_v26  ;;  %v298_v26 = vld [vmem:[%s2487_s11 + $0x320] sm:$0xff]  ;;  %v363_v44 = vpack.c.bf16 %v307_v32, %v300_v31  ;;  %v267_v31 = vld [vmem:[%s2487_s11 + $0x228] sm:$0xff] }
  0xb2   : > { %1058 = vmatmul.bf16.gmra.mxu1 %v343_v30  ;;  %v306_v30 = vld [vmem:[%s2487_s11 + $0x360] sm:$0xff]  ;;  %v361_v42 = vpack.c.bf16 %v305_v28, %v298_v26  ;;  %v2233_v28 = vld [vmem:[%s3071_s2 + $0x18] sm:$0xff] }
  0xb3   : > { %v814_v34 = vpop.f32.mrf.mxu2  ;;  %v362_v43 = vpack.c.bf16 %v306_v30, %v299_v29 }
  0xb4   : > { %v863_v35 = vpop.f32.mrf.mxu3  ;;  %v815_v36 = vadd.f32 %v2669_v27, %v814_v34 }
  0xb5   : > { %v2677_v38 = vpop.f32.mrf.mxu0 }
  0xb6   : > { %v2675_v37 = vadd.f32 %v863_v35, %v815_v36  ;;  %v301_v36 = vld [vmem:[%s2487_s11 + $0x338] sm:$0xff] }
  0xb7   : > { %v2679_v39 = vpop.f32.mrf.mxu1 }
  0xbb   : > { %v816_v46 = vpop.f32.mrf.mxu2 }
  0xbc   : > { %v2687_v47 = vpop.f32.mrf.mxu3  ;;  %v2692_v50 = vadd.f32 %v2669_v27, %v816_v46  ;;  %v364_v46 = vpack.c.bf16 %v308_v40, %v301_v36  ;;  %v2232_v36 = vld [vmem:[%s3071_s2 + $0x10] sm:$0xff] }
  0xbd   : > { %v799_v54 = vpop.f32.mrf.mxu0 }
  0xbe   : > { %v800_v56 = vadd.f32 %v2669_v27, %v799_v54 }
  0xbf   : > { %v848_v57 = vpop.f32.mrf.mxu1 }
  0xc0   : > { %916 = vmatmul.bf16.gmra.mxu2 %v347_v51  ;;  %v2695_v58 = vadd.f32 %v848_v57, %v800_v56  ;;  %1014 = vmatmul.bf16.gmra.mxu0 %v349_v53  ;;  %v204_v57 = vld [vmem:[%s2487_s11 + $0x30] sm:$0xff] }
  0xc1   : > { %965 = vmatmul.bf16.gmra.mxu3 %v348_v52  ;;  %v2237_v52 = vld [vmem:[%s3071_s2 + $0x38] sm:$0xff] }
  0xc2   : > { %1063 = vmatmul.bf16.gmra.mxu1 %v350_v55  ;;  %1218 = vmatpush.bf16.msra.mxu3 %v2237_v52 }
  0xc3   : > { %v819_v59 = vpop.f32.mrf.mxu2 }
  0xc4   : > { %v868_v60 = vpop.f32.mrf.mxu3  ;;  %v820_v61 = vadd.f32 %v2669_v27, %v819_v59  ;;  %v211_v59 = vld [vmem:[%s2487_s11 + $0x68] sm:$0xff] }
  0xc5   : > { %v2700_v63 = vpop.f32.mrf.mxu0  ;;  %v316_v1 = vpack.c.bf16 %v211_v59, %v204_v57  ;;  %v295_v57 = vld [vmem:[%s2487_s11 + $0x308] sm:$0xff] }
  0xc6   : > { %v2698_v62 = vadd.f32 %v868_v60, %v820_v61  ;;  %1219 = vmatpush.bf16.msra.mxu3 %v2236_v2 }
  0xc7   : > { %v2702_v0 = vpop.f32.mrf.mxu1 }
  0xca   : > { %1220 = vmatpush.bf16.msra.mxu3 %v2235_v10 }
  0xcb   : > { %v821_v7 = vpop.f32.mrf.mxu2 }
  0xcc   : > { %v2710_v8 = vpop.f32.mrf.mxu3  ;;  %v2715_v11 = vadd.f32 %v2669_v27, %v821_v7 }
  0xcd   : > { %v804_v15 = vpop.f32.mrf.mxu0 }
  0xce   : > { %v805_v17 = vadd.f32 %v2669_v27, %v804_v15  ;;  %v871_v59 = vadd.f32 %v2710_v8, %v2715_v11  ;;  %v302_v8 = vld [vmem:[%s2487_s11 + $0x340] sm:$0xff]  ;;  %v309_v11 = vld [vmem:[%s2487_s11 + $0x378] sm:$0xff] }
  0xcf   : > { %v853_v18 = vpop.f32.mrf.mxu1 }
  0xd0   : > { %921 = vmatmul.bf16.gmra.mxu2 %v354_v12  ;;  %v2718_v19 = vadd.f32 %v853_v18, %v805_v17  ;;  %1019 = vmatmul.bf16.gmra.mxu0 %v356_v14  ;;  %v239_v14 = vld [vmem:[%s2487_s11 + $0x148] sm:$0xff]  ;;  %v2234_v17 = vld [vmem:[%s3071_s2 + $0x20] sm:$0xff] }
  0xd1   : > { %970 = vmatmul.bf16.gmra.mxu3 %v355_v13 }
  0xd2   : > { %1068 = vmatmul.bf16.gmra.mxu1 %v357_v16  ;;  %1221 = vmatpush.bf16.msra.mxu3 %v2234_v17 }
  0xd3   : > { %v824_v20 = vpop.f32.mrf.mxu2 }
  0xd4   : > { %v873_v21 = vpop.f32.mrf.mxu3  ;;  %v825_v22 = vadd.f32 %v2669_v27, %v824_v20 }
  0xd5   : > { %v2723_v24 = vpop.f32.mrf.mxu0 }
  0xd6   : > { %v2721_v23 = vadd.f32 %v873_v21, %v825_v22  ;;  %v253_v21 = vld [vmem:[%s2487_s11 + $0x1b8] sm:$0xff]  ;;  %1222 = vmatpush.bf16.msra.mxu3 %v2233_v28 }
  0xd7   : > { %v2725_v25 = vpop.f32.mrf.mxu1 }
  0xda   : > { %1223 = vmatpush.bf16.msra.mxu3 %v2232_v36 }
  0xdb   : > { %v826_v34 = vpop.f32.mrf.mxu2 }
  0xdc   : > { %v2733_v35 = vpop.f32.mrf.mxu3  ;;  %v2738_v41 = vadd.f32 %v2669_v27, %v826_v34 }
  0xdd   : > { %v809_v45 = vpop.f32.mrf.mxu0 }
  0xde   : > { %v810_v48 = vadd.f32 %v2669_v27, %v809_v45  ;;  %v866_v45 = vadd.f32 %v2687_v47, %v2692_v50  ;;  %v288_v50 = vld [vmem:[%s2487_s11 + $0x2d0] sm:$0xff] }
  0xdf   : > { %v858_v49 = vpop.f32.mrf.mxu1  ;;  %v358_v2 = vpack.c.bf16 %v295_v57, %v288_v50 }
  0xe0   : > { %926 = vmatmul.bf16.gmra.mxu2 %v361_v42  ;;  %v859_v51 = vadd.f32 %v858_v49, %v810_v48  ;;  %1024 = vmatmul.bf16.gmra.mxu0 %v363_v44  ;;  %v281_v44 = vld [vmem:[%s2487_s11 + $0x298] sm:$0xff] }
  0xe1   : > { %975 = vmatmul.bf16.gmra.mxu3 %v362_v43  ;;  %v274_v43 = vld [vmem:[%s2487_s11 + $0x260] sm:$0xff] }
  0xe2   : > { %1073 = vmatmul.bf16.gmra.mxu1 %v364_v46  ;;  %v351_v49 = vpack.c.bf16 %v281_v44, %v274_v43 }
  0xe3   : > { %v829_v53 = vpop.f32.mrf.mxu2 }
  0xe4   : > { %v878_v54 = vpop.f32.mrf.mxu3  ;;  %v830_v55 = vadd.f32 %v2669_v27, %v829_v53 }
  0xe5   : > { %v2812_v52 = vpop.f32.mrf.mxu0 }
  0xe6   : > { %v2745_v56 = vadd.f32 %v878_v54, %v830_v55 }
  0xe7   : > { %v2817_v55 = vpop.f32.mrf.mxu1 }
  0xeb   : > { %v831_v60 = vpop.f32.mrf.mxu2 }
  0xec   : > { %v2750_v61 = vadd.f32 %v2669_v27, %v831_v60 }
  0xf0   : > { %2041 = vmatmul.msk.bf16.vlgmr.msra.gmra.mxu2 %vm760_vm0, %v316_v1 }
  0xf3   : > { %v892_v3 = vpop.f32.mrf.mxu2 }
  0xf4   : > { %v2757_v4 = vadd.f32 %v892_v3, %v2672_v33  ;;  %v232_v33 = vld [vmem:[%s2487_s11 + $0x110] sm:$0xff]  ;;  %v990_v3 = vpop.f32.mrf.mxu0 }
  0xf5   : > { %v330_v16 = vpack.c.bf16 %v239_v14, %v232_v33  ;;  %v876_v33 = vadd.f32 %v2733_v35, %v2738_v41 }
  0xfb   : > { %v2761_v7 = vpop.f32.mrf.mxu2 }
 0x100   : > { %2042 = vmatmul.msk.bf16.gmra.mxu2 %vm760_vm0, %v323_v9 }
 0x103   : > { %v897_v12 = vpop.f32.mrf.mxu2 }
 0x104   : > { %v2768_v13 = vadd.f32 %v897_v12, %v2695_v58  ;;  %v246_v58 = vld [vmem:[%s2487_s11 + $0x180] sm:$0xff]  ;;  %v992_v12 = vpop.f32.mrf.mxu0 }
 0x105   : > { %v337_v26 = vpack.c.bf16 %v253_v21, %v246_v58 }
 0x10b   : > { %v2772_v15 = vpop.f32.mrf.mxu2 }
 0x10c   : > { %v995_v21 = vpop.f32.mrf.mxu0 }
 0x110   : > { %2043 = vmatmul.msk.bf16.gmra.mxu2 %vm760_vm0, %v330_v16 }
 0x113   : > { %v902_v18 = vpop.f32.mrf.mxu2 }
 0x114   : > { %v2779_v20 = vadd.f32 %v902_v18, %v2718_v19  ;;  %v260_v19 = vld [vmem:[%s2487_s11 + $0x1f0] sm:$0xff]  ;;  %v365_v18 = vpack.c.bf16 %v309_v11, %v302_v8  ;;  %s189_s11 = scalar_lea.vmem [#allocation2], %s1842_s28 }
 0x115   : > { %v344_v34 = vpack.c.bf16 %v267_v31, %v260_v19  ;;  %v997_v31 = vpop.f32.mrf.mxu0 }
 0x11b   : > { %v2783_v22 = vpop.f32.mrf.mxu2 }
 0x120   : > { %2044 = vmatmul.msk.bf16.gmra.mxu2 %vm760_vm0, %v337_v26 }
 0x123   : > { %v907_v29 = vpop.f32.mrf.mxu2 }
 0x124   : > { %v2789_v30 = vadd.f32 %v907_v29, %v859_v51  ;;  %v880_v51 = vpop.f32.mrf.mxu3  ;;  %v797_v29 = vadd.f32 %v2669_v27, %v2677_v38  ;;  %v802_v38 = vadd.f32 %v2669_v27, %v2700_v63 }
 0x125   : > { %v881_v41 = vadd.f32 %v880_v51, %v2750_v61  ;;  %v2245_v61 = vld [vmem:[%s3071_s2 + $0x78] sm:$0xff] }
 0x126   : > { %v846_v35 = vadd.f32 %v2679_v39, %v797_v29  ;;  %1358 = vmatpush.bf16.msra.mxu0 %v2245_v61 }
 0x12b   : > { %v2793_v32 = vpop.f32.mrf.mxu2 }
 0x12c   : > { %v941_v47 = vpop.f32.mrf.mxu3 }
 0x12d   : > { %v942_v44 = vadd.f32 %v941_v47, %v2757_v4 }
 0x130   : > { %2045 = vmatmul.msk.bf16.gmra.mxu2 %vm760_vm0, %v344_v34 }
 0x133   : > { %v912_v40 = vpop.f32.mrf.mxu2 }
 0x134   : > { %v2800_v42 = vadd.f32 %v912_v40, %v2675_v37  ;;  %v2231_v37 = vld [vmem:[%s3071_s2 + $0x8] sm:$0xff]  ;;  %v943_v6 = vpop.f32.mrf.mxu3  ;;  %v895_v40 = vadd.f32 %v2761_v7, %v846_v35  ;;  %v851_v7 = vadd.f32 %v2702_v0, %v802_v38  ;;  %v807_v0 = vadd.f32 %v2669_v27, %v2723_v24 }
 0x135   : > { %1224 = vmatpush.bf16.msra.mxu3 %v2231_v37  ;;  %v1000_v37 = vpop.f32.mrf.mxu0 }
 0x139   : > { %1225 = vmatpush.bf16.msra.mxu3 %v2230_v5 }
 0x13b   : > { %v914_v46 = vpop.f32.mrf.mxu2 }
 0x13c   : > { %v2806_v48 = vadd.f32 %v914_v46, %v866_v45  ;;  %v946_v58 = vpop.f32.mrf.mxu3  ;;  %v944_v45 = vadd.f32 %v943_v6, %v895_v40 }
 0x13d   : > { %v1002_v63 = vpop.f32.mrf.mxu0  ;;  %v947_v5 = vadd.f32 %v946_v58, %v2768_v13  ;;  %v856_v13 = vadd.f32 %v2725_v25, %v807_v0  ;;  %v812_v25 = vadd.f32 %v2669_v27, %v2812_v52 }
 0x13e   : > { %v993_v39 = vadd.f32 %v992_v12, %v944_v45 }
 0x13f   : > { %v996_v8 = vadd.f32 %v995_v21, %v947_v5  ;;  %v905_v21 = vadd.f32 %v2783_v22, %v856_v13 }
 0x140   : > { %2046 = vmatmul.msk.bf16.gmra.mxu2 %vm760_vm0, %v351_v49  ;;  %v991_v49 = vadd.f32 %v990_v3, %v942_v44 }
 0x143   : > { %v917_v53 = vpop.f32.mrf.mxu2 }
 0x144   : > { %v2815_v54 = vadd.f32 %v917_v53, %v2698_v62  ;;  %v1039_v62 = vpop.f32.mrf.mxu1  ;;  %v948_v19 = vpop.f32.mrf.mxu3 }
 0x145   : > { %v1040_v51 = vadd.f32 %v1039_v62, %v991_v49 }
 0x14b   : > { %v919_v60 = vpop.f32.mrf.mxu2 }
 0x14c   : > { %v2823_v1 = vadd.f32 %v919_v60, %v871_v59  ;;  %v1041_v14 = vpop.f32.mrf.mxu1  ;;  %v900_v60 = vadd.f32 %v2772_v15, %v851_v7  ;;  %v2244_v15 = vld [vmem:[%s3071_s2 + $0x70] sm:$0xff] }
 0x14d   : > { %v1042_v50 = vadd.f32 %v1041_v14, %v993_v39  ;;  %1359 = vmatpush.bf16.msra.mxu0 %v2244_v15 }
 0x150   : > { %2047 = vmatmul.msk.bf16.gmra.mxu2 %vm760_vm0, %v358_v2 }
 0x153   : > { %v922_v9 = vpop.f32.mrf.mxu2 }
 0x154   : > { %v2830_v10 = vadd.f32 %v922_v9, %v2721_v23  ;;  %v1044_v28 = vpop.f32.mrf.mxu1  ;;  %v949_v9 = vadd.f32 %v948_v19, %v900_v60 }
 0x155   : > { %v1045_v14 = vadd.f32 %v1044_v28, %v996_v8 }
 0x15b   : > { %v924_v16 = vpop.f32.mrf.mxu2 }
 0x15c   : > { %v2836_v17 = vadd.f32 %v924_v16, %v876_v33  ;;  %v1046_v43 = vpop.f32.mrf.mxu1  ;;  %v998_v33 = vadd.f32 %v997_v31, %v949_v9  ;;  %v1005_v16 = vpop.f32.mrf.mxu0 }
 0x160   : > { %2048 = vmatmul.msk.bf16.gmra.mxu2 %vm760_vm0, %v365_v18  ;;  %v1047_v18 = vadd.f32 %v1046_v43, %v998_v33 }
 0x163   : > { %v927_v26 = vpop.f32.mrf.mxu2 }
 0x164   : > { %v2840_v23 = vadd.f32 %v927_v26, %v2745_v56  ;;  %v951_v56 = vpop.f32.mrf.mxu3  ;;  %v1049_v53 = vpop.f32.mrf.mxu1 }
 0x165   : > { %v952_v31 = vadd.f32 %v951_v56, %v2779_v20  ;;  %v1007_v28 = vpop.f32.mrf.mxu0  ;;  %v861_v20 = vadd.f32 %v2817_v55, %v812_v25  ;;  %v2242_v55 = vld [vmem:[%s3071_s2 + $0x60] sm:$0xff] }
 0x167   : > { %v1001_v45 = vadd.f32 %v1000_v37, %v952_v31  ;;  %v910_v37 = vadd.f32 %v2793_v32, %v861_v20 }
 0x169   : > { %v1050_v49 = vadd.f32 %v1049_v53, %v1001_v45 }
 0x16b   : > { %v929_v34 = vpop.f32.mrf.mxu2 }
 0x16c   : > { %v2846_v36 = vadd.f32 %v929_v34, %v881_v41  ;;  %v953_v47 = vpop.f32.mrf.mxu3  ;;  %v1051_v62 = vpop.f32.mrf.mxu1 }
 0x16d   : > { %v954_v40 = vadd.f32 %v953_v47, %v905_v21  ;;  %v1010_v7 = vpop.f32.mrf.mxu0 }
 0x16f   : > { %v1003_v43 = vadd.f32 %v1002_v63, %v954_v40 }
 0x171   : > { %v1052_v56 = vadd.f32 %v1051_v62, %v1003_v43 }
 0x173   : > { %v1088_v46 = vpop.f32.mrf.mxu2 }
 0x174   : > { %v1089_v4 = vadd.f32 %v1088_v46, %v1040_v51  ;;  %v956_v11 = vpop.f32.mrf.mxu3  ;;  %v1054_v19 = vpop.f32.mrf.mxu1  ;;  %v2243_v46 = vld [vmem:[%s3071_s2 + $0x68] sm:$0xff] }
 0x175   : > { %1360 = vmatpush.bf16.msra.mxu0 %v2243_v46  ;;  %v957_v52 = vadd.f32 %v956_v11, %v2789_v30 }
 0x176   : > { %v1128_v2 = vmax.f32 %v1089_v4, 0.0 }
 0x177   : > { %v1006_v60 = vadd.f32 %v1005_v16, %v957_v52  ;;  %v2239_v52 = vld [vmem:[%s3071_s2 + $0x48] sm:$0xff] }
 0x179   : > { %v1055_v63 = vadd.f32 %v1054_v19, %v1006_v60  ;;  %1361 = vmatpush.bf16.msra.mxu0 %v2242_v55 }
 0x17b   : > { %v1090_v57 = vpop.f32.mrf.mxu2 }
 0x17c   : > { %v1091_v59 = vadd.f32 %v1090_v57, %v1042_v50  ;;  %v958_v24 = vpop.f32.mrf.mxu3  ;;  %v1056_v22 = vpop.f32.mrf.mxu1 }
 0x17d   : > { %v959_v57 = vadd.f32 %v958_v24, %v910_v37 }
 0x17e   : > { %v1129_v3 = vmax.f32 %v1091_v59, 0.0 }
 0x180   : > { %v1144_v6 = vpack.c.bf16 %v1129_v3, %v1128_v2  ;;  %v1008_v2 = vadd.f32 %v1007_v28, %v959_v57  ;;  %v1012_v3 = vpop.f32.mrf.mxu0 }
 0x182   : > { %1226 = vmatmul.bf16.vlgmr.msra.gmra.mxu3 %v1144_v6  ;;  %v1057_v32 = vadd.f32 %v1056_v22, %v1008_v2  ;;  %v2240_v22 = vld [vmem:[%s3071_s2 + $0x50] sm:$0xff] }
 0x183   : > { %v1093_v12 = vpop.f32.mrf.mxu2 }
 0x184   : > { %v1094_v58 = vadd.f32 %v1093_v12, %v1045_v14  ;;  %v961_v38 = vpop.f32.mrf.mxu3  ;;  %v1059_v47 = vpop.f32.mrf.mxu1 }
 0x185   : > { %v962_v11 = vadd.f32 %v961_v38, %v2800_v42 }
 0x186   : > { %v1130_v35 = vmax.f32 %v1094_v58, 0.0  ;;  %v2241_v58 = vld [vmem:[%s3071_s2 + $0x58] sm:$0xff] }
 0x187   : > { %v1011_v16 = vadd.f32 %v1010_v7, %v962_v11  ;;  %1362 = vmatpush.bf16.msra.mxu0 %v2241_v58 }
 0x188   : > { %v1015_v33 = vpop.f32.mrf.mxu0 }
 0x18b   : > { %v1095_v26 = vpop.f32.mrf.mxu2  ;;  %1363 = vmatpush.bf16.msra.mxu0 %v2240_v22  ;;  %v2251_v22 = vld [vmem:[%s3071_s2 + $0xa8] sm:$0xff] }
 0x18c   : > { %v1096_v29 = vadd.f32 %v1095_v26, %v1047_v18  ;;  %v963_v53 = vpop.f32.mrf.mxu3  ;;  %v1061_v6 = vpop.f32.mrf.mxu1 }
 0x18d   : > { %v964_v15 = vadd.f32 %v963_v53, %v2806_v48  ;;  %v2238_v53 = vld [vmem:[%s3071_s2 + $0x40] sm:$0xff] }
 0x18e   : > { %v1131_v41 = vmax.f32 %v1096_v29, 0.0  ;;  %v1060_v29 = vadd.f32 %v1059_v47, %v1011_v16 }
 0x18f   : > { %v1013_v18 = vadd.f32 %v1012_v3, %v964_v15  ;;  %1364 = vmatpush.bf16.msra.mxu0 %v2239_v52 }
 0x190   : > { %v1145_v34 = vpack.c.bf16 %v1131_v41, %v1130_v35  ;;  %v1017_v35 = vpop.f32.mrf.mxu0 }
 0x191   : > { %v1062_v19 = vadd.f32 %v1061_v6, %v1013_v18 }
 0x192   : > { %1231 = vmatmul.bf16.gmra.mxu3 %v1145_v34 }
 0x193   : > { %v1098_v44 = vpop.f32.mrf.mxu2  ;;  %1365 = vmatpush.bf16.msra.mxu0 %v2238_v53 }
 0x194   : > { %v1099_v39 = vadd.f32 %v1098_v44, %v1050_v49  ;;  %v966_v62 = vpop.f32.mrf.mxu3  ;;  %v1064_v13 = vpop.f32.mrf.mxu1 }
 0x195   : > { %v967_v34 = vadd.f32 %v966_v62, %v2815_v54 }
 0x196   : > { %v1132_v50 = vmax.f32 %v1099_v39, 0.0 }
 0x197   : > { %v1016_v25 = vadd.f32 %v1015_v33, %v967_v34  ;;  %v2252_v34 = vld [vmem:[%s3071_s2 + $0xb0] sm:$0xff] }
 0x198   : > { %v1020_v43 = vpop.f32.mrf.mxu0 }
 0x199   : > { %v1065_v49 = vadd.f32 %v1064_v13, %v1016_v25 }
 0x19b   : > { %v1100_v61 = vpop.f32.mrf.mxu2 }
 0x19c   : > { %v1101_v51 = vadd.f32 %v1100_v61, %v1052_v56  ;;  %v968_v26 = vpop.f32.mrf.mxu3  ;;  %v1066_v48 = vpop.f32.mrf.mxu1 }
 0x19d   : > { %v969_v44 = vadd.f32 %v968_v26, %v2823_v1 }
 0x19e   : > { %v1133_v27 = vmax.f32 %v1101_v51, 0.0 }
 0x19f   : > { %v1018_v46 = vadd.f32 %v1017_v35, %v969_v44 }
 0x1a0   : > { %v1146_v4 = vpack.c.bf16 %v1133_v27, %v1132_v50  ;;  %v1022_v1 = vpop.f32.mrf.mxu0 }
 0x1a1   : > { %v1067_v20 = vadd.f32 %v1066_v48, %v1018_v46 }
 0x1a2   : > { %1236 = vmatmul.bf16.gmra.mxu3 %v1146_v4 }
 0x1a3   : > { %v1103_v59 = vpop.f32.mrf.mxu2 }
 0x1a4   : > { %v1104_v5 = vadd.f32 %v1103_v59, %v1055_v63  ;;  %v971_v28 = vpop.f32.mrf.mxu3  ;;  %v1069_v38 = vpop.f32.mrf.mxu1 }
 0x1a5   : > { %v972_v37 = vadd.f32 %v971_v28, %v2830_v10 }
 0x1a6   : > { %v1134_v12 = vmax.f32 %v1104_v5, 0.0 }
 0x1a7   : > { %v1021_v57 = vadd.f32 %v1020_v43, %v972_v37 }
 0x1a8   : > { %v1025_v10 = vpop.f32.mrf.mxu0 }
 0x1a9   : > { %v1070_v2 = vadd.f32 %v1069_v38, %v1021_v57 }
 0x1ab   : > { %v1105_v9 = vpop.f32.mrf.mxu2 }
 0x1ac   : > { %v1106_v30 = vadd.f32 %v1105_v9, %v1057_v32  ;;  %v973_v39 = vpop.f32.mrf.mxu3  ;;  %v1071_v4 = vpop.f32.mrf.mxu1 }
 0x1ad   : > { %v974_v27 = vadd.f32 %v973_v39, %v2836_v17 }
 0x1ae   : > { %v1135_v8 = vmax.f32 %v1106_v30, 0.0 }
 0x1af   : > { %v1023_v60 = vadd.f32 %v1022_v1, %v974_v27 }
 0x1b0   : > { %v1147_v0 = vpack.c.bf16 %v1135_v8, %v1134_v12  ;;  %v1027_v8 = vpop.f32.mrf.mxu0 }
 0x1b1   : > { %v1072_v55 = vadd.f32 %v1071_v4, %v1023_v60 }
 0x1b2   : > { %1241 = vmatmul.bf16.gmra.mxu3 %v1147_v0 }
 0x1b3   : > { %v1108_v14 = vpop.f32.mrf.mxu2 }
 0x1b4   : > { %v1109_v21 = vadd.f32 %v1108_v14, %v1060_v29  ;;  %v976_v59 = vpop.f32.mrf.mxu3  ;;  %v1074_v32 = vpop.f32.mrf.mxu1 }
 0x1b5   : > { %v977_v30 = vadd.f32 %v976_v59, %v2840_v23  ;;  %v2253_v23 = vld [vmem:[%s3071_s2 + $0xb8] sm:$0xff] }
 0x1b6   : > { %v1136_v24 = vmax.f32 %v1109_v21, 0.0  ;;  %1498 = vmatpush.bf16.msra.mxu1 %v2253_v23  ;;  %v2903_v21 = vld [vmem:[%s3072_s3 + $0x1] ss:$0 sm:$0xff] }
 0x1b7   : > { %v1026_v0 = vadd.f32 %v1025_v10, %v977_v30 }
 0x1b9   : > { %v1075_v14 = vadd.f32 %v1074_v32, %v1026_v0 }
 0x1ba   : > { %1499 = vmatpush.bf16.msra.mxu1 %v2252_v34 }
 0x1bb   : > { %v1110_v42 = vpop.f32.mrf.mxu2 }
 0x1bc   : > { %v1111_v41 = vadd.f32 %v1110_v42, %v1062_v19  ;;  %v978_v9 = vpop.f32.mrf.mxu3  ;;  %v1076_v15 = vpop.f32.mrf.mxu1 }
 0x1bd   : > { %v979_v12 = vadd.f32 %v978_v9, %v2846_v36 }
 0x1be   : > { %v1137_v31 = vmax.f32 %v1111_v41, 0.0  ;;  %1500 = vmatpush.bf16.msra.mxu1 %v2251_v22 }
 0x1bf   : > { %v1028_v33 = vadd.f32 %v1027_v8, %v979_v12  ;;  %v2246_v12 = vld [vmem:[%s3071_s2 + $0x80] sm:$0xff] }
 0x1c0   : > { %v1148_v40 = vpack.c.bf16 %v1137_v31, %v1136_v24 }
 0x1c1   : > { %v1077_v16 = vadd.f32 %v1076_v15, %v1028_v33 }
 0x1c2   : > { %1246 = vmatmul.bf16.gmra.mxu3 %v1148_v40 }
 0x1c3   : > { %v1113_v45 = vpop.f32.mrf.mxu2 }
 0x1c4   : > { %v1114_v56 = vadd.f32 %v1113_v45, %v1065_v49 }
 0x1c6   : > { %v1138_v51 = vmax.f32 %v1114_v56, 0.0 }
 0x1cb   : > { %v1115_v54 = vpop.f32.mrf.mxu2 }
 0x1cc   : > { %v1116_v61 = vadd.f32 %v1115_v54, %v1067_v20 }
 0x1ce   : > { %v1139_v7 = vmax.f32 %v1116_v61, 0.0 }
 0x1d0   : > { %v1149_v50 = vpack.c.bf16 %v1139_v7, %v1138_v51  ;;  %v2250_v51 = vld [vmem:[%s3071_s2 + $0xa0] sm:$0xff] }
 0x1d1   : > { %1501 = vmatpush.bf16.msra.mxu1 %v2250_v51 }
 0x1d2   : > { %1251 = vmatmul.bf16.gmra.mxu3 %v1149_v50 }
 0x1d3   : > { %v1118_v47 = vpop.f32.mrf.mxu2 }
 0x1d4   : > { %v1119_v17 = vadd.f32 %v1118_v47, %v1070_v2  ;;  %v2249_v47 = vld [vmem:[%s3071_s2 + $0x98] sm:$0xff] }
 0x1d5   : > { %1502 = vmatpush.bf16.msra.mxu1 %v2249_v47 }
 0x1d6   : > { %v1140_v5 = vmax.f32 %v1119_v17, 0.0  ;;  %v2248_v17 = vld [vmem:[%s3071_s2 + $0x90] sm:$0xff] }
 0x1d9   : > { %1503 = vmatpush.bf16.msra.mxu1 %v2248_v17 }
 0x1db   : > { %v1120_v3 = vpop.f32.mrf.mxu2 }
 0x1dc   : > { %v1121_v63 = vadd.f32 %v1120_v3, %v1072_v55 }
 0x1de   : > { %v1141_v6 = vmax.f32 %v1121_v63, 0.0 }
 0x1e0   : > { %v1150_v62 = vpack.c.bf16 %v1141_v6, %v1140_v5 }
 0x1e2   : > { %1256 = vmatmul.bf16.gmra.mxu3 %v1150_v62  ;;  %v2247_v62 = vld [vmem:[%s3071_s2 + $0x88] sm:$0xff] }
 0x1e3   : > { %v1123_v11 = vpop.f32.mrf.mxu2  ;;  %1504 = vmatpush.bf16.msra.mxu1 %v2247_v62 }
 0x1e4   : > { %v1124_v13 = vadd.f32 %v1123_v11, %v1075_v14 }
 0x1e6   : > { %v1142_v26 = vmax.f32 %v1124_v13, 0.0 }
 0x1e7   : > { %1505 = vmatpush.bf16.msra.mxu1 %v2246_v12 }
 0x1eb   : > { %v1125_v18 = vpop.f32.mrf.mxu2 }
 0x1ec   : > { %v1126_v58 = vadd.f32 %v1125_v18, %v1077_v16 }
 0x1ee   : > { %v1143_v29 = vmax.f32 %v1126_v58, 0.0 }
 0x1f0   : > { %v1151_v19 = vpack.c.bf16 %v1143_v29, %v1142_v26 }
 0x1f2   : > { %1261 = vmatmul.bf16.gmra.mxu3 %v1151_v19 }
 0x205   : > { %v1227_v36 = vpop.f32.mrf.mxu3 }
 0x206   : > { %v1228_v35 = vadd.f32 %v2903_v21, %v1227_v36 }
 0x208   : > { %v1267_v24 = vmax.f32 %v1228_v35, 0.0  ;;  %v2297_v35 = vld [vmem:[%s3072_s3 + $0x2] ss:$0 sm:$0xff] }
 0x20d   : > { %v1229_v42 = vpop.f32.mrf.mxu3 }
 0x20e   : > { %v1230_v41 = vadd.f32 %v2903_v21, %v1229_v42 }
 0x210   : > { %v1268_v31 = vmax.f32 %v1230_v41, 0.0 }
 0x212   : > { %v1283_v48 = vpack.c.bf16 %v1268_v31, %v1267_v24 }
 0x214   : > { %1366 = vmatmul.bf16.vlgmr.msra.gmra.mxu0 %v1283_v48 }
 0x215   : > { %v1232_v40 = vpop.f32.mrf.mxu3 }
 0x216   : > { %v1233_v28 = vadd.f32 %v2903_v21, %v1232_v40 }
 0x218   : > { %v1269_v25 = vmax.f32 %v1233_v28, 0.0 }
 0x21d   : > { %v1234_v44 = vpop.f32.mrf.mxu3 }
 0x21e   : > { %v1235_v45 = vadd.f32 %v2903_v21, %v1234_v44 }
 0x220   : > { %v1270_v43 = vmax.f32 %v1235_v45, 0.0 }
 0x222   : > { %v1284_v46 = vpack.c.bf16 %v1270_v43, %v1269_v25 }
 0x224   : > { %1371 = vmatmul.bf16.gmra.mxu0 %v1284_v46 }
 0x225   : > { %v1237_v49 = vpop.f32.mrf.mxu3 }
 0x226   : > { %v1238_v38 = vadd.f32 %v2903_v21, %v1237_v49 }
 0x228   : > { %v1271_v39 = vmax.f32 %v1238_v38, 0.0 }
 0x22d   : > { %v1239_v20 = vpop.f32.mrf.mxu3 }
 0x22e   : > { %v1240_v56 = vadd.f32 %v2903_v21, %v1239_v20 }
 0x230   : > { %v1272_v54 = vmax.f32 %v1240_v56, 0.0 }
 0x232   : > { %v1285_v61 = vpack.c.bf16 %v1272_v54, %v1271_v39 }
 0x234   : > { %1376 = vmatmul.bf16.gmra.mxu0 %v1285_v61 }
 0x235   : > { %v1242_v7 = vpop.f32.mrf.mxu3 }
 0x236   : > { %v1243_v1 = vadd.f32 %v2903_v21, %v1242_v7 }
 0x238   : > { %v1273_v27 = vmax.f32 %v1243_v1, 0.0 }
 0x23d   : > { %v1244_v37 = vpop.f32.mrf.mxu3 }
 0x23e   : > { %v1245_v50 = vadd.f32 %v2903_v21, %v1244_v37 }
 0x240   : > { %v1274_v52 = vmax.f32 %v1245_v50, 0.0 }
 0x242   : > { %v1286_v4 = vpack.c.bf16 %v1274_v52, %v1273_v27 }
 0x244   : > { %1381 = vmatmul.bf16.gmra.mxu0 %v1286_v4 }
 0x245   : > { %v1247_v57 = vpop.f32.mrf.mxu3 }
 0x246   : > { %v1248_v53 = vadd.f32 %v2903_v21, %v1247_v57 }
 0x248   : > { %v1275_v2 = vmax.f32 %v1248_v53, 0.0 }
 0x24d   : > { %v1249_v59 = vpop.f32.mrf.mxu3 }
 0x24e   : > { %v1250_v60 = vadd.f32 %v2903_v21, %v1249_v59 }
 0x250   : > { %v1276_v10 = vmax.f32 %v1250_v60, 0.0 }
 0x252   : > { %v1287_v55 = vpack.c.bf16 %v1276_v10, %v1275_v2 }
 0x254   : > { %1386 = vmatmul.bf16.gmra.mxu0 %v1287_v55 }
 0x255   : > { %v1252_v3 = vpop.f32.mrf.mxu3 }
 0x256   : > { %v1253_v63 = vadd.f32 %v2903_v21, %v1252_v3 }
 0x258   : > { %v1277_v6 = vmax.f32 %v1253_v63, 0.0 }
 0x25d   : > { %v1254_v32 = vpop.f32.mrf.mxu3 }
 0x25e   : > { %v1255_v5 = vadd.f32 %v2903_v21, %v1254_v32 }
 0x260   : > { %v1278_v9 = vmax.f32 %v1255_v5, 0.0 }
 0x262   : > { %v1288_v30 = vpack.c.bf16 %v1278_v9, %v1277_v6 }
 0x264   : > { %1391 = vmatmul.bf16.gmra.mxu0 %v1288_v30 }
 0x265   : > { %v1257_v8 = vpop.f32.mrf.mxu3 }
 0x266   : > { %v1258_v11 = vadd.f32 %v2903_v21, %v1257_v8 }
 0x268   : > { %v1279_v15 = vmax.f32 %v1258_v11, 0.0 }
 0x26d   : > { %v1259_v0 = vpop.f32.mrf.mxu3 }
 0x26e   : > { %v1260_v33 = vadd.f32 %v2903_v21, %v1259_v0 }
 0x270   : > { %v1280_v14 = vmax.f32 %v1260_v33, 0.0 }
 0x272   : > { %v1289_v16 = vpack.c.bf16 %v1280_v14, %v1279_v15 }
 0x274   : > { %1396 = vmatmul.bf16.gmra.mxu0 %v1289_v16 }
 0x275   : > { %v1262_v13 = vpop.f32.mrf.mxu3 }
 0x276   : > { %v1263_v18 = vadd.f32 %v2903_v21, %v1262_v13  ;;  %v2298_v13 = vld [vmem:[%s3072_s3 + $0x3] ss:$0 sm:$0xff] }
 0x278   : > { %v1281_v29 = vmax.f32 %v1263_v18, 0.0 }
 0x27d   : > { %v1264_v58 = vpop.f32.mrf.mxu3 }
 0x27e   : > { %v1265_v26 = vadd.f32 %v2903_v21, %v1264_v58 }
 0x280   : > { %v1282_v19 = vmax.f32 %v1265_v26, 0.0 }
 0x282   : > { %v1290_v23 = vpack.c.bf16 %v1282_v19, %v1281_v29 }
 0x284   : > { %1401 = vmatmul.bf16.gmra.mxu0 %v1290_v23 }
 0x291   : > { %v1367_v36 = vpop.f32.mrf.mxu0 }
 0x292   : > { %v1368_v42 = vadd.f32 %v2297_v35, %v1367_v36 }
 0x294   : > { %v1407_v31 = vmax.f32 %v1368_v42, 0.0 }
 0x299   : > { %v1369_v41 = vpop.f32.mrf.mxu0 }
 0x29a   : > { %v1370_v24 = vadd.f32 %v2297_v35, %v1369_v41 }
 0x29c   : > { %v1408_v48 = vmax.f32 %v1370_v24, 0.0 }
 0x29e   : > { %v1423_v34 = vpack.c.bf16 %v1408_v48, %v1407_v31 }
 0x2a0   : > { %1506 = vmatmul.bf16.vlgmr.msra.gmra.mxu1 %v1423_v34 }
 0x2a1   : > { %v1372_v40 = vpop.f32.mrf.mxu0 }
 0x2a2   : > { %v1373_v28 = vadd.f32 %v2297_v35, %v1372_v40 }
 0x2a4   : > { %v1409_v45 = vmax.f32 %v1373_v28, 0.0 }
 0x2a9   : > { %v1374_v44 = vpop.f32.mrf.mxu0 }
 0x2aa   : > { %v1375_v21 = vadd.f32 %v2297_v35, %v1374_v44 }
 0x2ac   : > { %v1410_v25 = vmax.f32 %v1375_v21, 0.0 }
 0x2ae   : > { %v1424_v43 = vpack.c.bf16 %v1410_v25, %v1409_v45 }
 0x2b0   : > { %1511 = vmatmul.bf16.gmra.mxu1 %v1424_v43 }
 0x2b1   : > { %v1377_v46 = vpop.f32.mrf.mxu0 }
 0x2b2   : > { %v1378_v22 = vadd.f32 %v2297_v35, %v1377_v46 }
 0x2b4   : > { %v1411_v20 = vmax.f32 %v1378_v22, 0.0 }
 0x2b9   : > { %v1379_v49 = vpop.f32.mrf.mxu0 }
 0x2ba   : > { %v1380_v38 = vadd.f32 %v2297_v35, %v1379_v49 }
 0x2bc   : > { %v1412_v56 = vmax.f32 %v1380_v38, 0.0 }
 0x2be   : > { %v1425_v39 = vpack.c.bf16 %v1412_v56, %v1411_v20 }
 0x2c0   : > { %1516 = vmatmul.bf16.gmra.mxu1 %v1425_v39 }
 0x2c1   : > { %v1382_v54 = vpop.f32.mrf.mxu0 }
 0x2c2   : > { %v1383_v61 = vadd.f32 %v2297_v35, %v1382_v54 }
 0x2c4   : > { %v1413_v1 = vmax.f32 %v1383_v61, 0.0 }
 0x2c9   : > { %v1384_v51 = vpop.f32.mrf.mxu0 }
 0x2ca   : > { %v1385_v7 = vadd.f32 %v2297_v35, %v1384_v51 }
 0x2cc   : > { %v1414_v37 = vmax.f32 %v1385_v7, 0.0 }
 0x2ce   : > { %v1426_v50 = vpack.c.bf16 %v1414_v37, %v1413_v1 }
 0x2d0   : > { %1521 = vmatmul.bf16.gmra.mxu1 %v1426_v50 }
 0x2d1   : > { %v1387_v27 = vpop.f32.mrf.mxu0 }
 0x2d2   : > { %v1388_v52 = vadd.f32 %v2297_v35, %v1387_v27 }
 0x2d4   : > { %v1415_v57 = vmax.f32 %v1388_v52, 0.0 }
 0x2d9   : > { %v1389_v4 = vpop.f32.mrf.mxu0 }
 0x2da   : > { %v1390_v47 = vadd.f32 %v2297_v35, %v1389_v4 }
 0x2dc   : > { %v1416_v53 = vmax.f32 %v1390_v47, 0.0 }
 0x2de   : > { %v1427_v59 = vpack.c.bf16 %v1416_v53, %v1415_v57 }
 0x2e0   : > { %1526 = vmatmul.bf16.gmra.mxu1 %v1427_v59 }
 0x2e1   : > { %v1392_v60 = vpop.f32.mrf.mxu0 }
 0x2e2   : > { %v1393_v2 = vadd.f32 %v2297_v35, %v1392_v60 }
 0x2e4   : > { %v1417_v17 = vmax.f32 %v1393_v2, 0.0 }
 0x2e9   : > { %v1394_v10 = vpop.f32.mrf.mxu0 }
 0x2ea   : > { %v1395_v55 = vadd.f32 %v2297_v35, %v1394_v10 }
 0x2ec   : > { %v1418_v3 = vmax.f32 %v1395_v55, 0.0 }
 0x2ee   : > { %v1428_v63 = vpack.c.bf16 %v1418_v3, %v1417_v17 }
 0x2f0   : > { %1531 = vmatmul.bf16.gmra.mxu1 %v1428_v63 }
 0x2f1   : > { %v1397_v32 = vpop.f32.mrf.mxu0 }
 0x2f2   : > { %v1398_v5 = vadd.f32 %v2297_v35, %v1397_v32 }
 0x2f4   : > { %v1419_v30 = vmax.f32 %v1398_v5, 0.0 }
 0x2f9   : > { %v1399_v6 = vpop.f32.mrf.mxu0 }
 0x2fa   : > { %v1400_v9 = vadd.f32 %v2297_v35, %v1399_v6 }
 0x2fc   : > { %v1420_v62 = vmax.f32 %v1400_v9, 0.0 }
 0x2fe   : > { %v1429_v12 = vpack.c.bf16 %v1420_v62, %v1419_v30 }
 0x300   : > { %1536 = vmatmul.bf16.gmra.mxu1 %v1429_v12 }
 0x301   : > { %v1402_v8 = vpop.f32.mrf.mxu0 }
 0x302   : > { %v1403_v11 = vadd.f32 %v2297_v35, %v1402_v8 }
 0x304   : > { %v1421_v15 = vmax.f32 %v1403_v11, 0.0 }
 0x309   : > { %v1404_v0 = vpop.f32.mrf.mxu0 }
 0x30a   : > { %v1405_v33 = vadd.f32 %v2297_v35, %v1404_v0 }
 0x30c   : > { %v1422_v14 = vmax.f32 %v1405_v33, 0.0 }
 0x30e   : > { %v1430_v16 = vpack.c.bf16 %v1422_v14, %v1421_v15 }
 0x310   : > { %1541 = vmatmul.bf16.gmra.mxu1 %v1430_v16 }
 0x31d   : > { %v1507_v18 = vpop.f32.mrf.mxu1 }
 0x31e   : > { %v1508_v58 = vadd.f32 %v2298_v13, %v1507_v18 }
 0x320   : > { %1547 = vmax.xlane.f32.xlu0 %v1508_v58 }
 0x325   : > { %v1509_v26 = vpop.f32.mrf.mxu1 }
 0x326   : > { %v1510_v29 = vadd.f32 %v2298_v13, %v1509_v26 }
 0x328   : > { %1549 = vmax.xlane.f32.xlu0 %v1510_v29 }
 0x32d   : > { %v1512_v19 = vpop.f32.mrf.mxu1 }
 0x32e   : > { %v1513_v23 = vadd.f32 %v2298_v13, %v1512_v19 }
 0x330   : > { %1551 = vmax.xlane.f32.xlu1 %v1513_v23 }
 0x335   : > { %v1514_v36 = vpop.f32.mrf.mxu1 }
 0x336   : > { %v1515_v42 = vadd.f32 %v2298_v13, %v1514_v36 }
 0x338   : > { %1553 = vmax.xlane.f32.xlu1 %v1515_v42 }
 0x33d   : > { %v1517_v35 = vpop.f32.mrf.mxu1 }
 0x33e   : > { %v1518_v41 = vadd.f32 %v2298_v13, %v1517_v35 }
 0x340   : > { %1555 = vmax.xlane.f32.xlu2 %v1518_v41 }
 0x345   : > { %v1519_v24 = vpop.f32.mrf.mxu1 }
 0x346   : > { %v1520_v31 = vadd.f32 %v2298_v13, %v1519_v24 }
 0x348   : > { %1557 = vmax.xlane.f32.xlu2 %v1520_v31 }
 0x34d   : > { %v1522_v48 = vpop.f32.mrf.mxu1 }
 0x34e   : > { %v2948_v34 = vadd.f32 %v2298_v13, %v1522_v48 }
 0x350   : > { %1559 = vmax.xlane.f32.xlu0 %v2948_v34 }
 0x355   : > { %v1524_v40 = vpop.f32.mrf.mxu1 }
 0x356   : > { %v2951_v28 = vadd.f32 %v2298_v13, %v1524_v40 }
 0x358   : > { %1561 = vmax.xlane.f32.xlu1 %v2951_v28 }
 0x35d   : > { %v1527_v44 = vpop.f32.mrf.mxu1 }
 0x35e   : > { %v2954_v21 = vadd.f32 %v2298_v13, %v1527_v44 }
 0x360   : > { %1563 = vmax.xlane.f32.xlu2 %v2954_v21 }
 0x365   : > { %v1529_v45 = vpop.f32.mrf.mxu1 }
 0x366   : > { %v2957_v25 = vadd.f32 %v2298_v13, %v1529_v45 }
 0x368   : > { %1565 = vmax.xlane.f32.xlu0 %v2957_v25 }
 0x36d   : > { %v1532_v43 = vpop.f32.mrf.mxu1 }
 0x36e   : > { %v2960_v46 = vadd.f32 %v2298_v13, %v1532_v43 }
 0x370   : > { %1567 = vmax.xlane.f32.xlu1 %v2960_v46 }
 0x375   : > { %v1534_v22 = vpop.f32.mrf.mxu1 }
 0x376   : > { %v2963_v49 = vadd.f32 %v2298_v13, %v1534_v22 }
 0x378   : > { %1569 = vmax.xlane.f32.xlu2 %v2963_v49 }
 0x37d   : > { %v1537_v38 = vpop.f32.mrf.mxu1 }
 0x37e   : > { %v2966_v20 = vadd.f32 %v2298_v13, %v1537_v38 }
 0x380   : > { %1571 = vmax.xlane.f32.xlu0 %v2966_v20 }
 0x385   : > { %v1539_v56 = vpop.f32.mrf.mxu1 }
 0x386   : > { %v2969_v39 = vadd.f32 %v2298_v13, %v1539_v56 }
 0x388   : > { %1573 = vmax.xlane.f32.xlu1 %v2969_v39 }
 0x38d   : > { %v1542_v54 = vpop.f32.mrf.mxu1 }
 0x38e   : > { %v2972_v61 = vadd.f32 %v2298_v13, %v1542_v54 }
 0x390   : > { %1575 = vmax.xlane.f32.xlu2 %v2972_v61 }
 0x393   : > { %v1548_v51 = vpop.xlane.xlu0 %1547 }
 0x394   : > { %v2975_v7 = vsub.f32 %v1508_v58, %v1548_v51 }
 0x395   : > { %v1544_v1 = vpop.f32.mrf.mxu1 }
 0x396   : > { %v1595_v37 = vmul.f32 1.442695, %v2975_v7  ;;  %v2978_v50 = vadd.f32 %v2298_v13, %v1544_v1 }
 0x398   : > { %2299 = vpow2.f32 %v1595_v37  ;;  %1577 = vmax.xlane.f32.xlu0 %v2978_v50 }
 0x39b   : > { %v1550_v27 = vpop.xlane.xlu0 %1549 }
 0x39c   : > { %v2981_v52 = vsub.f32 %v1510_v29, %v1550_v27 }
 0x39e   : > { %v2300_v4 = vpop.eup %2299  ;;  %v1597_v47 = vmul.f32 1.442695, %v2981_v52 }
 0x39f   : > { %1627 = vadd.xlane.f32.xlu1 %v2300_v4 }
 0x3a0   : > { %2301 = vpow2.f32 %v1597_v47 }
 0x3a3   : > { %v1552_v57 = vpop.xlane.xlu1 %1551 }
 0x3a4   : > { %v2984_v53 = vsub.f32 %v1513_v23, %v1552_v57 }
 0x3a6   : > { %v2302_v59 = vpop.eup %2301  ;;  %v1599_v60 = vmul.f32 1.442695, %v2984_v53 }
 0x3a7   : > { %1629 = vadd.xlane.f32.xlu2 %v2302_v59 }
 0x3a8   : > { %2303 = vpow2.f32 %v1599_v60 }
 0x3ab   : > { %v1554_v2 = vpop.xlane.xlu1 %1553 }
 0x3ac   : > { %v2987_v10 = vsub.f32 %v1515_v42, %v1554_v2 }
 0x3ae   : > { %v2304_v55 = vpop.eup %2303  ;;  %v1601_v17 = vmul.f32 1.442695, %v2987_v10 }
 0x3af   : > { %1631 = vadd.xlane.f32.xlu0 %v2304_v55 }
 0x3b0   : > { %2305 = vpow2.f32 %v1601_v17 }
 0x3b3   : > { %v1556_v3 = vpop.xlane.xlu2 %1555 }
 0x3b4   : > { %v2990_v63 = vsub.f32 %v1518_v41, %v1556_v3 }
 0x3b6   : > { %v2306_v32 = vpop.eup %2305  ;;  %v1603_v5 = vmul.f32 1.442695, %v2990_v63 }
 0x3b7   : > { %1633 = vadd.xlane.f32.xlu1 %v2306_v32 }
 0x3b8   : > { %2307 = vpow2.f32 %v1603_v5 }
 0x3bb   : > { %v1558_v6 = vpop.xlane.xlu2 %1557 }
 0x3bc   : > { %v2993_v9 = vsub.f32 %v1520_v31, %v1558_v6 }
 0x3be   : > { %v2308_v30 = vpop.eup %2307  ;;  %v1605_v62 = vmul.f32 1.442695, %v2993_v9 }
 0x3bf   : > { %1635 = vadd.xlane.f32.xlu2 %v2308_v30 }
 0x3c0   : > { %2309 = vpow2.f32 %v1605_v62 }
 0x3c3   : > { %v1560_v12 = vpop.xlane.xlu0 %1559 }
 0x3c4   : > { %v2997_v8 = vsub.f32 %v2948_v34, %v1560_v12 }
 0x3c6   : > { %v2310_v11 = vpop.eup %2309  ;;  %v1607_v0 = vmul.f32 1.442695, %v2997_v8 }
 0x3c7   : > { %1637 = vadd.xlane.f32.xlu0 %v2310_v11 }
 0x3c8   : > { %2311 = vpow2.f32 %v1607_v0 }
 0x3cb   : > { %v1562_v33 = vpop.xlane.xlu1 %1561 }
 0x3cc   : > { %v3001_v15 = vsub.f32 %v2951_v28, %v1562_v33 }
 0x3ce   : > { %v2312_v14 = vpop.eup %2311  ;;  %v1609_v16 = vmul.f32 1.442695, %v3001_v15 }
 0x3cf   : > { %1639 = vadd.xlane.f32.xlu1 %v2312_v14 }
 0x3d0   : > { %2313 = vpow2.f32 %v1609_v16 }
 0x3d3   : > { %v1564_v13 = vpop.xlane.xlu2 %1563 }
 0x3d4   : > { %v3005_v18 = vsub.f32 %v2954_v21, %v1564_v13 }
 0x3d6   : > { %v2314_v58 = vpop.eup %2313  ;;  %v1611_v26 = vmul.f32 1.442695, %v3005_v18 }
 0x3d7   : > { %1641 = vadd.xlane.f32.xlu2 %v2314_v58 }
 0x3d8   : > { %2315 = vpow2.f32 %v1611_v26 }
 0x3db   : > { %v1566_v29 = vpop.xlane.xlu0 %1565 }
 0x3dc   : > { %v3009_v19 = vsub.f32 %v2957_v25, %v1566_v29 }
 0x3de   : > { %v2316_v23 = vpop.eup %2315  ;;  %v1613_v36 = vmul.f32 1.442695, %v3009_v19 }
 0x3df   : > { %1643 = vadd.xlane.f32.xlu0 %v2316_v23 }
 0x3e0   : > { %2317 = vpow2.f32 %v1613_v36 }
 0x3e3   : > { %v1568_v42 = vpop.xlane.xlu1 %1567 }
 0x3e4   : > { %v3013_v35 = vsub.f32 %v2960_v46, %v1568_v42 }
 0x3e6   : > { %v2318_v41 = vpop.eup %2317  ;;  %v1615_v24 = vmul.f32 1.442695, %v3013_v35 }
 0x3e7   : > { %1645 = vadd.xlane.f32.xlu1 %v2318_v41 }
 0x3e8   : > { %2319 = vpow2.f32 %v1615_v24 }
 0x3eb   : > { %v1570_v31 = vpop.xlane.xlu2 %1569 }
 0x3ec   : > { %v3017_v48 = vsub.f32 %v2963_v49, %v1570_v31 }
 0x3ee   : > { %v2320_v34 = vpop.eup %2319  ;;  %v1617_v40 = vmul.f32 1.442695, %v3017_v48 }
 0x3ef   : > { %1647 = vadd.xlane.f32.xlu2 %v2320_v34 }
 0x3f0   : > { %2321 = vpow2.f32 %v1617_v40 }
 0x3f3   : > { %v1572_v28 = vpop.xlane.xlu0 %1571 }
 0x3f4   : > { %v3021_v44 = vsub.f32 %v2966_v20, %v1572_v28 }
 0x3f6   : > { %v2322_v21 = vpop.eup %2321  ;;  %v1619_v45 = vmul.f32 1.442695, %v3021_v44 }
 0x3f7   : > { %1649 = vadd.xlane.f32.xlu0 %v2322_v21 }
 0x3f8   : > { %2323 = vpow2.f32 %v1619_v45 }
 0x3fb   : > { %v1574_v25 = vpop.xlane.xlu1 %1573 }
 0x3fc   : > { %v3025_v43 = vsub.f32 %v2969_v39, %v1574_v25 }
 0x3fe   : > { %v2324_v46 = vpop.eup %2323  ;;  %v1621_v22 = vmul.f32 1.442695, %v3025_v43 }
 0x3ff   : > { %1651 = vadd.xlane.f32.xlu1 %v2324_v46 }
 0x400   : > { %2325 = vpow2.f32 %v1621_v22 }
 0x403   : > { %v1576_v49 = vpop.xlane.xlu2 %1575 }
 0x404   : > { %v3029_v38 = vsub.f32 %v2972_v61, %v1576_v49 }
 0x406   : > { %v2326_v20 = vpop.eup %2325  ;;  %v1623_v56 = vmul.f32 1.442695, %v3029_v38 }
 0x407   : > { %1653 = vadd.xlane.f32.xlu2 %v2326_v20 }
 0x408   : > { %2327 = vpow2.f32 %v1623_v56 }
 0x40b   : > { %v1578_v54 = vpop.xlane.xlu0 %1577 }
 0x40c   : > { %v3033_v51 = vsub.f32 %v2978_v50, %v1578_v54 }
 0x40e   : > { %v2328_v39 = vpop.eup %2327  ;;  %v1625_v1 = vmul.f32 1.442695, %v3033_v51 }
 0x40f   : > { %1655 = vadd.xlane.f32.xlu0 %v2328_v39 }
 0x410   : > { %2329 = vpow2.f32 %v1625_v1 }
 0x412   : > { %v1628_v27 = vpop.xlane.xlu1 %1627 }
 0x413   : > { %2331 = vlog2.f32 %v1628_v27 }
 0x416   : > { %v2330_v37 = vpop.eup %2329 }
 0x417   : > { %1657 = vadd.xlane.f32.xlu1 %v2330_v37 }
 0x419   : > { %v2332_v4 = vpop.eup %2331 }
 0x41a   : > { %v1630_v61 = vpop.xlane.xlu2 %1629  ;;  %v1660_v47 = vmul.f32 0.6931472, %v2332_v4 }
 0x41b   : > { %2333 = vlog2.f32 %v1630_v61 }
 0x41c   : > { %v1691_v59 = vsub.f32 %v2975_v7, %v1660_v47 }
 0x421   : > { %v2334_v60 = vpop.eup %2333 }
 0x422   : > { %v1632_v57 = vpop.xlane.xlu0 %1631  ;;  %v1662_v50 = vmul.f32 0.6931472, %v2334_v60 }
 0x423   : > { %2335 = vlog2.f32 %v1632_v57 }
 0x424   : > { %v1692_v55 = vsub.f32 %v2981_v52, %v1662_v50 }
 0x429   : > { %v2336_v17 = vpop.eup %2335 }
 0x42a   : > { %v1634_v2 = vpop.xlane.xlu1 %1633  ;;  %v1664_v3 = vmul.f32 0.6931472, %v2336_v17 }
 0x42b   : > { %2337 = vlog2.f32 %v1634_v2 }
 0x42c   : > { %v1693_v5 = vsub.f32 %v2984_v53, %v1664_v3 }
 0x430   : > { %1707 = vxpose.xlu2.b32.start [1/16] (narrow) %v1691_v59, 16 }
 0x431   : > { %v2338_v6 = vpop.eup %2337 }
 0x432   : > { %v1636_v32 = vpop.xlane.xlu2 %1635  ;;  %v1666_v30 = vmul.f32 0.6931472, %v2338_v6 }
 0x433   : > { %2339 = vlog2.f32 %v1636_v32 }
 0x434   : > { %v1694_v7 = vsub.f32 %v2987_v10, %v1666_v30 }
 0x438   : > { %1708 = vxpose.xlu2.b32.cont [2/16] (narrow) %v1692_v55, 16 }
 0x439   : > { %v2340_v12 = vpop.eup %2339 }
 0x43a   : > { %v1638_v62 = vpop.xlane.xlu0 %1637  ;;  %v1668_v11 = vmul.f32 0.6931472, %v2340_v12 }
 0x43b   : > { %2341 = vlog2.f32 %v1638_v62 }
 0x43c   : > { %v1695_v52 = vsub.f32 %v2990_v63, %v1668_v11 }
 0x440   : > { %1709 = vxpose.xlu2.b32.cont [3/16] (narrow) %v1693_v5, 16 }
 0x441   : > { %v2342_v33 = vpop.eup %2341 }
 0x442   : > { %v1640_v0 = vpop.xlane.xlu1 %1639  ;;  %v1670_v14 = vmul.f32 0.6931472, %v2342_v33 }
 0x443   : > { %2343 = vlog2.f32 %v1640_v0 }
 0x444   : > { %v1696_v53 = vsub.f32 %v2993_v9, %v1670_v14 }
 0x448   : > { %1710 = vxpose.xlu2.b32.cont [4/16] (narrow) %v1694_v7, 16 }
 0x449   : > { %v2344_v13 = vpop.eup %2343 }
 0x44a   : > { %v1642_v16 = vpop.xlane.xlu2 %1641  ;;  %v1672_v58 = vmul.f32 0.6931472, %v2344_v13 }
 0x44b   : > { %2345 = vlog2.f32 %v1642_v16 }
 0x44c   : > { %v1697_v10 = vsub.f32 %v2997_v8, %v1672_v58 }
 0x450   : > { %1711 = vxpose.xlu2.b32.cont [5/16] (narrow) %v1695_v52, 16 }
 0x451   : > { %v2346_v29 = vpop.eup %2345 }
 0x452   : > { %v1644_v26 = vpop.xlane.xlu0 %1643  ;;  %v1674_v23 = vmul.f32 0.6931472, %v2346_v29 }
 0x453   : > { %2347 = vlog2.f32 %v1644_v26 }
 0x454   : > { %v1698_v63 = vsub.f32 %v3001_v15, %v1674_v23 }
 0x458   : > { %1712 = vxpose.xlu2.b32.cont [6/16] (narrow) %v1696_v53, 16 }
 0x459   : > { %v2348_v42 = vpop.eup %2347 }
 0x45a   : > { %v1646_v36 = vpop.xlane.xlu1 %1645  ;;  %v1676_v41 = vmul.f32 0.6931472, %v2348_v42 }
 0x45b   : > { %2349 = vlog2.f32 %v1646_v36 }
 0x45c   : > { %v1699_v9 = vsub.f32 %v3005_v18, %v1676_v41 }
 0x460   : > { %1713 = vxpose.xlu2.b32.cont [7/16] (narrow) %v1697_v10, 16 }
 0x461   : > { %v2350_v31 = vpop.eup %2349 }
 0x462   : > { %v1648_v24 = vpop.xlane.xlu2 %1647  ;;  %v1678_v34 = vmul.f32 0.6931472, %v2350_v31 }
 0x463   : > { %2351 = vlog2.f32 %v1648_v24 }
 0x464   : > { %v1700_v8 = vsub.f32 %v3009_v19, %v1678_v34 }
 0x468   : > { %1714 = vxpose.xlu2.b32.cont [8/16] (narrow) %v1698_v63, 16 }
 0x469   : > { %v2352_v28 = vpop.eup %2351 }
 0x46a   : > { %v1650_v40 = vpop.xlane.xlu0 %1649  ;;  %v1680_v21 = vmul.f32 0.6931472, %v2352_v28 }
 0x46b   : > { %2353 = vlog2.f32 %v1650_v40 }
 0x46c   : > { %v1701_v15 = vsub.f32 %v3013_v35, %v1680_v21 }
 0x470   : > { %1715 = vxpose.xlu2.b32.cont [9/16] (narrow) %v1699_v9, 16 }
 0x471   : > { %v2354_v25 = vpop.eup %2353 }
 0x472   : > { %v1652_v45 = vpop.xlane.xlu1 %1651  ;;  %v1682_v46 = vmul.f32 0.6931472, %v2354_v25 }
 0x473   : > { %2355 = vlog2.f32 %v1652_v45 }
 0x474   : > { %v1702_v18 = vsub.f32 %v3017_v48, %v1682_v46 }
 0x478   : > { %1716 = vxpose.xlu2.b32.cont [10/16] (narrow) %v1700_v8, 16 }
 0x479   : > { %v2356_v49 = vpop.eup %2355 }
 0x47a   : > { %v1654_v22 = vpop.xlane.xlu2 %1653  ;;  %v1684_v20 = vmul.f32 0.6931472, %v2356_v49 }
 0x47b   : > { %2357 = vlog2.f32 %v1654_v22 }
 0x47c   : > { %v1703_v19 = vsub.f32 %v3021_v44, %v1684_v20 }
 0x480   : > { %1717 = vxpose.xlu2.b32.cont [11/16] (narrow) %v1701_v15, 16 }
 0x481   : > { %v2358_v54 = vpop.eup %2357 }
 0x482   : > { %v1656_v56 = vpop.xlane.xlu0 %1655  ;;  %v1686_v39 = vmul.f32 0.6931472, %v2358_v54 }
 0x483   : > { %2359 = vlog2.f32 %v1656_v56 }
 0x484   : > { %v1704_v1 = vsub.f32 %v3025_v43, %v1686_v39 }
 0x488   : > { %1718 = vxpose.xlu2.b32.cont [12/16] (narrow) %v1702_v18, 16 }
 0x489   : > { %v2360_v37 = vpop.eup %2359 }
 0x48a   : > { %v1658_v35 = vpop.xlane.xlu1 %1657  ;;  %v1688_v27 = vmul.f32 0.6931472, %v2360_v37 }
 0x48b   : > { %2361 = vlog2.f32 %v1658_v35 }
 0x48c   : > { %v1705_v48 = vsub.f32 %v3029_v38, %v1688_v27 }
 0x490   : > { %1719 = vxpose.xlu2.b32.cont [13/16] (narrow) %v1703_v19, 16 }
 0x491   : > { %v2362_v61 = vpop.eup %2361 }
 0x492   : > { %v1690_v4 = vmul.f32 0.6931472, %v2362_v61 }
 0x494   : > { %v1706_v47 = vsub.f32 %v3033_v51, %v1690_v4 }
 0x498   : > { %1720 = vxpose.xlu2.b32.cont [14/16] (narrow) %v1704_v1, 16 }
 0x4a0   : > { %1721 = vxpose.xlu2.b32.cont [15/16] (narrow) %v1705_v48, 16 }
 0x4a8   : > { %1722 = vxpose.xlu2.b32.end [16/16] (narrow) %v1706_v47, 16 }
 0x4c9   : > { %v1723_v44 = vpop.trf.xlu2 }
 0x4ca   : > { %1739 = vst [vmem:[%s189_s11] sm:$0xff] %v1723_v44 }
 0x4ce   : > { %1747 = sbr.rel (!%p2437_p4) target bundleno = 1243 (0x4db), region = 40 }
 0x4d1   : > { %v1724_v57 = vpop.trf.xlu2  ;;  %v1780_v43 = vld [vmem:[%s189_s11] sm:$0xff] (%p2437_p4) }
 0x4d2   : > { %1740 = vst [vmem:[%s189_s11 + $0x8] sm:$0xff] %v1724_v57 }
 0x4d3   : > { %1781 = vst [vmem:[%s1749_s6] sm:$0xff] %v1780_v43 }
 0x4d9   : > { %v1782_v38 = vld [vmem:[%s189_s11 + $0x8] sm:$0xff] }
 0x4da   : > { %1783 = vst [vmem:[%s1749_s6 + $0x10] sm:$0xff] %v1782_v38 }
 0x4db PF: > { %p11_p8 = scmp.ge.s32.totalorder %s2427_s19, 4   ;;  %s3075_s15 = smov %s2381_s16 }
 0x4dc   : > { %s3076_s16 = smov %s2435_s22  ;;  %s3077_s17 = smov %s2427_s19 }
 0x4dd   :  { %13 = sbr.rel (!%p11_p8) target bundleno = 2 (0x2), region = 106 }

</bundles_post_ra>
